<compile_context>
chip_gen: v6e
topology: v6e:2x2x1
jax: 0.10.0
libtpu: 0.0.40
codegen_flags: <defaults>
</compile_context>

<pallas_src>
import jax
import jax.numpy as jnp
from jax.experimental import pallas as pl
from jax.experimental.pallas import tpu as pltpu


# --------------------------------------------------------------------------
# Kernel
# --------------------------------------------------------------------------
def _fcb_kernel(xc_ref, xpv_ref, xnx_ref, w1_ref, w2_ref, o_ref, y1p_ref):
    """One (batch, row-tile) grid step.

    xc_ref : (1, TH, W, Cin)   rows [r0, r0+TH) of the raw NHWC input
    xpv_ref: (1, 1,  W, Cin)   row r0-1 (clamped; overwritten for the first tile)
    xnx_ref: (1, 1,  W, Cin)   row r0+TH (clamped; overwritten for the last tile)
    w1_ref : (3*Cin,  Cout)    (1,3) conv taps, row index = k*Cin + c
    w2_ref : (3*Cout, Cout)    (3,1) conv taps, row index = k*Cout + c
    o_ref  : (1, Cout, TH*W)   channels-first, lane-dense output block
    y1p_ref: (TH+2, W, Cout)   VMEM scratch = pad2-padded conv1 rows for conv2
    """
    t = pl.program_id(1)
    n_t = pl.num_programs(1)

    TH, W, Cin = xc_ref.shape[1], xc_ref.shape[2], xc_ref.shape[3]
    Cout = w1_ref.shape[1]
    W1 = W - 1                       # conv1 output width

    w1 = w1_ref[...]
    w2 = w2_ref[...]

    def conv1(rows):
        """rows: (R, W, Cin) -> (R, W1, Cout) via one fused K = 3*Cin matmul.
        The outer pad's reflected right column (x[..., W-2, :]) is folded into
        the k=2 tap, so `rows` is the raw (unpadded) input."""
        r = rows.shape[0]
        tap0 = rows[:, 0:W1, :]
        tap1 = rows[:, 1:W, :]
        if W1 > 1:
            tap2 = jnp.concatenate(
                [rows[:, 2:W, :], rows[:, W - 2:W - 1, :]], axis=1)
        else:
            tap2 = rows[:, W - 2:W - 1, :]
        lhs = jnp.concatenate([tap0, tap1, tap2], axis=-1)       # (R, W1, 3Cin)
        y = jnp.dot(lhs.reshape(r * W1, 3 * Cin), w1,
                    preferred_element_type=jnp.float32)          # (R*W1, Cout)
        return y.reshape(r, W1, Cout)

    # conv1 on the TH rows of this tile -> pad2 rows 1..TH, columns 1..W-1.
    y1p_ref[1:TH + 1, 1:W, :] = conv1(xc_ref[0])

    # conv1 on the two halo rows (row above / below the tile) in one matmul.
    halo = jnp.concatenate([xpv_ref[0], xnx_ref[0]], axis=0)     # (2, W, Cin)
    y1h = conv1(halo)                                            # (2, W1, Cout)
    y1p_ref[0:1, 1:W, :] = y1h[0:1]
    y1p_ref[TH + 1:TH + 2, 1:W, :] = y1h[1:2]

    # pad2 top reflection (first tile only): padded row 0 = conv1 row 1.
    @pl.when(t == 0)
    def _():
        y1p_ref[0:1, 1:W, :] = y1p_ref[2:3, 1:W, :]

    # pad1 bottom reflection feeding conv2's last row (last tile only):
    # global conv1 row H = conv1(x[H-2]), which is already scratch row TH-1.
    @pl.when(t == n_t - 1)
    def _():
        y1p_ref[TH + 1:TH + 2, 1:W, :] = y1p_ref[TH - 1:TH, 1:W, :]

    # pad2 left reflection: padded column 0 = conv1 column 1 (= scratch col 2).
    y1p_ref[:, 0:1, :] = y1p_ref[:, 2:3, :]

    # conv2 ((3,1) along H) as one fused K = 3*Cout matmul over the scratch.
    y1p = y1p_ref[...]                                           # (TH+2, W, Cout)
    lhs2 = jnp.concatenate(
        [y1p[0:TH], y1p[1:TH + 1], y1p[2:TH + 2]], axis=-1)      # (TH, W, 3Cout)
    out = jnp.dot(lhs2.reshape(TH * W, 3 * Cout), w2,
                  preferred_element_type=jnp.float32)            # (TH*W, Cout)

    # Channels-first, lane-dense store: (Cout, TH*W).
    o_ref[0] = out.T.astype(o_ref.dtype)


# --------------------------------------------------------------------------
# Tiling helpers
# --------------------------------------------------------------------------
def _round_up(x, m):
    return (x + m - 1) // m * m


def _vmem_block_bytes(shape, itemsize=4):
    """VMEM footprint of a buffer, accounting for (8, 128) tile padding."""
    if len(shape) == 1:
        return _round_up(shape[0], 128) * itemsize
    lead = 1
    for d in shape[:-2]:
        lead *= d
    return lead * _round_up(shape[-2], 8) * _round_up(shape[-1], 128) * itemsize


def _step_vmem_bytes(th, W, Cin, Cout):
    """Per-grid-step VMEM: double-buffered blocks + scratch + weights."""
    return (2 * (_vmem_block_bytes((th, W, Cin))            # input tile
                 + 2 * _vmem_block_bytes((1, W, Cin))        # halo rows
                 + _vmem_block_bytes((Cout, th * W)))        # output tile
            + _vmem_block_bytes((th + 2, W, Cout))           # conv1/pad2 scratch
            + 2 * (_vmem_block_bytes((3 * Cin, Cout))
                   + _vmem_block_bytes((3 * Cout, Cout))))


def _pick_tile_h(H, W, Cin, Cout, budget_bytes=8 << 20):
    """Largest divisor of H that (a) keeps the per-step VMEM footprint inside a
    budget comfortable even on v7x's 64 MiB VMEM, (b) keeps the lane-dense
    output block legal ((TH*W) % 128 == 0 unless the block spans all of H*W),
    and (c) when possible gives >= 2 grid steps along H so the pipeline /
    megacore have work to overlap."""
    divisors = [d for d in range(1, H + 1) if H % d == 0]
    legal = [d for d in divisors if (d * W) % 128 == 0 or d == H]
    for prefer_multi_step in (True, False):
        for d in sorted(legal, reverse=True):
            if prefer_multi_step and d == H and H > 1:
                continue
            if _step_vmem_bytes(d, W, Cin, Cout) <= budget_bytes:
                return d
    return min(legal)


# --------------------------------------------------------------------------
# Wrapper
# --------------------------------------------------------------------------
def fcb_no_act(x_nchw, w1_oihw, w2_oihw):
    """Forward pass of FCB_No_Act (bias=False).

    x_nchw: (N, Cin, H, W);  w1: (Cout, Cin, 1, 3);  w2: (Cout, Cout, 3, 1).
    Returns (N, Cout, H, W).  Requires H >= 2 and W >= 3 (same as the pads).
    """
    N, Cin, H, W = x_nchw.shape
    Cout = w1_oihw.shape[0]

    # NCHW -> NHWC for the channel matmuls (single XLA transpose on the input;
    # the output side needs no transpose at all -- see out_specs below).
    x = jnp.transpose(x_nchw, (0, 2, 3, 1))

    # Per-tap weights packed for the fused-K matmuls:
    #   w1f[k*Cin + c, o] = w1[o, c, 0, k];  w2f[k*Cout + c, o] = w2[o, c, k, 0]
    w1f = jnp.transpose(w1_oihw[:, :, 0, :], (2, 1, 0)).reshape(3 * Cin, Cout)
    w2f = jnp.transpose(w2_oihw[:, :, :, 0], (2, 1, 0)).reshape(3 * Cout, Cout)

    TH = _pick_tile_h(H, W, Cin, Cout)
    nT = H // TH

    flops = 2 * N * ((H + 2 * nT) * (W - 1) * 3 * Cin * Cout
                     + H * W * 3 * Cout * Cout)
    bytes_accessed = 4 * (N * H * W * (Cin + Cout)
                          + 3 * Cin * Cout + 3 * Cout * Cout)
    vmem_limit = int(min(64 * 1024 * 1024,
                         max(16 * 1024 * 1024,
                             4 * _step_vmem_bytes(TH, W, Cin, Cout))))

    out_flat = pl.pallas_call(
        _fcb_kernel,
        out_shape=jax.ShapeDtypeStruct((N, Cout, H * W), x.dtype),
        grid_spec=pltpu.PrefetchScalarGridSpec(
            num_scalar_prefetch=0,
            grid=(N, nT),
            in_specs=[
                # rows [t*TH, (t+1)*TH) of image n
                pl.BlockSpec((1, TH, W, Cin), lambda n, t: (n, t, 0, 0)),
                # halo row above (clamped to 0; overwritten when t == 0)
                pl.BlockSpec((1, 1, W, Cin),
                             lambda n, t: (n, jnp.maximum(t * TH - 1, 0), 0, 0)),
                # halo row below (clamped to H-1; overwritten when t == nT-1)
                pl.BlockSpec((1, 1, W, Cin),
                             lambda n, t: (n, jnp.minimum((t + 1) * TH, H - 1),
                                           0, 0)),
                # tiny constant weights; block index never changes so they are
                # only fetched once.
                pl.BlockSpec((3 * Cin, Cout), lambda n, t: (0, 0)),
                pl.BlockSpec((3 * Cout, Cout), lambda n, t: (0, 0)),
            ],
            # Lane-dense (>=128 lanes), channels-first output block.
            out_specs=pl.BlockSpec((1, Cout, TH * W), lambda n, t: (n, 0, t)),
            scratch_shapes=[pltpu.VMEM((TH + 2, W, Cout), jnp.float32)],
        ),
        compiler_params=pltpu.CompilerParams(
            dimension_semantics=("parallel", "parallel"),
            vmem_limit_bytes=vmem_limit),
        cost_estimate=pl.CostEstimate(flops=int(flops), transcendentals=0,
                                      bytes_accessed=int(bytes_accessed)),
    )(x, x, x, w1f, w2f)

    # (N, Cout, H*W) -> (N, Cout, H, W): free reshape, already NCHW.
    return out_flat.reshape(N, Cout, H, W)


# --------------------------------------------------------------------------
# Pure-JAX reference (validation only)
# --------------------------------------------------------------------------
def _reference(x, w1, w2):
    """Replica of the PyTorch forward (NCHW)."""
    xp = jnp.pad(x, ((0, 0), (0, 0), (0, 1), (0, 1)), mode="reflect")
    y1 = jax.lax.conv_general_dilated(
        xp, w1, (1, 1), "VALID", dimension_numbers=("NCHW", "OIHW", "NCHW"))
    y1p = jnp.pad(y1, ((0, 0), (0, 0), (1, 0), (1, 0)), mode="reflect")
    y2 = jax.lax.conv_general_dilated(
        y1p, w2, (1, 1), "VALID", dimension_numbers=("NCHW", "OIHW", "NCHW"))
    return y2


if __name__ == "__main__":
    N, Cin, Cout, H, W = 2, 4, 8, 16, 16

    key = jax.random.PRNGKey(0)
    kx, k1, k2 = jax.random.split(key, 3)
    x = jax.random.normal(kx, (N, Cin, H, W), dtype=jnp.float32)
    # Conv2d weight shapes, bias=False (module default).
    w1 = 0.1 * jax.random.normal(k1, (Cout, Cin, 1, 3), dtype=jnp.float32)
    w2 = 0.1 * jax.random.normal(k2, (Cout, Cout, 3, 1), dtype=jnp.float32)

    out = jax.block_until_ready(jax.jit(fcb_no_act)(x, w1, w2))
    ref = jax.block_until_ready(_reference(x, w1, w2))

    assert out.shape == (N, Cout, H, W), out.shape
    assert bool(jnp.allclose(out, ref, atol=1e-4, rtol=1e-4)), \
        float(jnp.max(jnp.abs(out - ref)))
    print("KERNEL_OK")
</pallas_src>

<mosaic_0001>
module attributes {stable_mosaic.version = 11 : i64} {
  func.func @_fcb_kernel(%arg0: i32, %arg1: i32, %arg2: memref<1x8x16x4xf32, #tpu.memory_space<vmem>>, %arg3: memref<1x1x16x4xf32, #tpu.memory_space<vmem>>, %arg4: memref<1x1x16x4xf32, #tpu.memory_space<vmem>>, %arg5: memref<12x8xf32, #tpu.memory_space<vmem>>, %arg6: memref<24x8xf32, #tpu.memory_space<vmem>>, %arg7: memref<1x8x128xf32, #tpu.memory_space<vmem>>, %arg8: memref<10x16x8xf32, #tpu.memory_space<vmem>>) attributes {dimension_semantics = [#tpu.dimension_semantics<parallel>, #tpu.dimension_semantics<parallel>], iteration_bounds = array<i64: 2, 2>, scalar_prefetch = 0 : i64, scratch_operands = 1 : i64, tpu.core_type = #tpu.core_type<tc>, window_params = [{transform_indices = @transform_0, window_bounds = array<i64: 1, 8, 16, 4>}, {transform_indices = @transform_1, window_bounds = array<i64: 1, 1, 16, 4>}, {transform_indices = @transform_2, window_bounds = array<i64: 1, 1, 16, 4>}, {pipeline_mode = #tpu.pipeline_mode<synchronous>, transform_indices = @transform_3, window_bounds = array<i64: 12, 8>}, {pipeline_mode = #tpu.pipeline_mode<synchronous>, transform_indices = @transform_4, window_bounds = array<i64: 24, 8>}, {transform_indices = @transform_5, window_bounds = array<i64: 1, 8, 128>}]} {
    %c0 = arith.constant 0 : index
    %c0_0 = arith.constant 0 : index
    %0 = vector.load %arg5[%c0, %c0_0] : memref<12x8xf32, #tpu.memory_space<vmem>>, vector<12x8xf32>
    %c0_1 = arith.constant 0 : index
    %c0_2 = arith.constant 0 : index
    %1 = vector.load %arg6[%c0_1, %c0_2] : memref<24x8xf32, #tpu.memory_space<vmem>>, vector<24x8xf32>
    %c0_3 = arith.constant 0 : index
    %c0_4 = arith.constant 0 : index
    %c0_5 = arith.constant 0 : index
    %c0_6 = arith.constant 0 : index
    %2 = vector.load %arg2[%c0_3, %c0_4, %c0_5, %c0_6] : memref<1x8x16x4xf32, #tpu.memory_space<vmem>>, vector<1x8x16x4xf32>
    %3 = vector.shape_cast %2 : vector<1x8x16x4xf32> to vector<8x16x4xf32>
    %4 = vector.extract_strided_slice %3 {offsets = [0, 0, 0], sizes = [8, 15, 4], strides = [1, 1, 1]} : vector<8x16x4xf32> to vector<8x15x4xf32>
    %5 = vector.extract_strided_slice %3 {offsets = [0, 1, 0], sizes = [8, 15, 4], strides = [1, 1, 1]} : vector<8x16x4xf32> to vector<8x15x4xf32>
    %6 = vector.extract_strided_slice %3 {offsets = [0, 2, 0], sizes = [8, 14, 4], strides = [1, 1, 1]} : vector<8x16x4xf32> to vector<8x14x4xf32>
    %7 = vector.extract_strided_slice %3 {offsets = [0, 14, 0], sizes = [8, 1, 4], strides = [1, 1, 1]} : vector<8x16x4xf32> to vector<8x1x4xf32>
    %8 = tpu.concatenate %6, %7 in 1 : vector<8x14x4xf32>, vector<8x1x4xf32> -> vector<8x15x4xf32>
    %9 = tpu.concatenate %4, %5, %8 in 2 : vector<8x15x4xf32>, vector<8x15x4xf32>, vector<8x15x4xf32> -> vector<8x15x12xf32>
    %10 = vector.shape_cast %9 : vector<8x15x12xf32> to vector<120x12xf32>
    %cst = arith.constant dense<0.000000e+00> : vector<120x8xf32>
    %11 = tpu.matmul %10, %0, %cst {dimension_numbers = #tpu.dot_dimension_numbers<[1], [0], [0], [1], [0, 0, 1, 1], [], []>} : vector<120x12xf32>, vector<12x8xf32>, vector<120x8xf32> -> vector<120x8xf32>
    %12 = vector.shape_cast %11 : vector<120x8xf32> to vector<8x15x8xf32>
    %c1 = arith.constant 1 : index
    %c1_7 = arith.constant 1 : index
    %c0_8 = arith.constant 0 : index
    %13 = vector.load %arg8[%c1, %c1_7, %c0_8] : memref<10x16x8xf32, #tpu.memory_space<vmem>>, vector<8x15x8xf32>
    tpu.vector_store %arg8[%c1, %c1_7, %c0_8], %12 {strides = array<i32>} : memref<10x16x8xf32, #tpu.memory_space<vmem>>, vector<8x15x8xf32>,
    %c0_9 = arith.constant 0 : index
    %c0_10 = arith.constant 0 : index
    %c0_11 = arith.constant 0 : index
    %c0_12 = arith.constant 0 : index
    %14 = vector.load %arg3[%c0_9, %c0_10, %c0_11, %c0_12] : memref<1x1x16x4xf32, #tpu.memory_space<vmem>>, vector<1x1x16x4xf32>
    %15 = vector.shape_cast %14 : vector<1x1x16x4xf32> to vector<1x16x4xf32>
    %c0_13 = arith.constant 0 : index
    %c0_14 = arith.constant 0 : index
    %c0_15 = arith.constant 0 : index
    %c0_16 = arith.constant 0 : index
    %16 = vector.load %arg4[%c0_13, %c0_14, %c0_15, %c0_16] : memref<1x1x16x4xf32, #tpu.memory_space<vmem>>, vector<1x1x16x4xf32>
    %17 = vector.shape_cast %16 : vector<1x1x16x4xf32> to vector<1x16x4xf32>
    %18 = tpu.concatenate %15, %17 in 0 : vector<1x16x4xf32>, vector<1x16x4xf32> -> vector<2x16x4xf32>
    %19 = vector.extract_strided_slice %18 {offsets = [0, 0, 0], sizes = [2, 15, 4], strides = [1, 1, 1]} : vector<2x16x4xf32> to vector<2x15x4xf32>
    %20 = vector.extract_strided_slice %18 {offsets = [0, 1, 0], sizes = [2, 15, 4], strides = [1, 1, 1]} : vector<2x16x4xf32> to vector<2x15x4xf32>
    %21 = vector.extract_strided_slice %18 {offsets = [0, 2, 0], sizes = [2, 14, 4], strides = [1, 1, 1]} : vector<2x16x4xf32> to vector<2x14x4xf32>
    %22 = vector.extract_strided_slice %18 {offsets = [0, 14, 0], sizes = [2, 1, 4], strides = [1, 1, 1]} : vector<2x16x4xf32> to vector<2x1x4xf32>
    %23 = tpu.concatenate %21, %22 in 1 : vector<2x14x4xf32>, vector<2x1x4xf32> -> vector<2x15x4xf32>
    %24 = tpu.concatenate %19, %20, %23 in 2 : vector<2x15x4xf32>, vector<2x15x4xf32>, vector<2x15x4xf32> -> vector<2x15x12xf32>
    %25 = vector.shape_cast %24 : vector<2x15x12xf32> to vector<30x12xf32>
    %cst_17 = arith.constant dense<0.000000e+00> : vector<30x8xf32>
    %26 = tpu.matmul %25, %0, %cst_17 {dimension_numbers = #tpu.dot_dimension_numbers<[1], [0], [0], [1], [0, 0, 1, 1], [], []>} : vector<30x12xf32>, vector<12x8xf32>, vector<30x8xf32> -> vector<30x8xf32>
    %27 = vector.shape_cast %26 : vector<30x8xf32> to vector<2x15x8xf32>
    %28 = vector.extract_strided_slice %27 {offsets = [0, 0, 0], sizes = [1, 15, 8], strides = [1, 1, 1]} : vector<2x15x8xf32> to vector<1x15x8xf32>
    %c0_18 = arith.constant 0 : index
    %c1_19 = arith.constant 1 : index
    %c0_20 = arith.constant 0 : index
    %29 = vector.load %arg8[%c0_18, %c1_19, %c0_20] : memref<10x16x8xf32, #tpu.memory_space<vmem>>, vector<1x15x8xf32>
    tpu.vector_store %arg8[%c0_18, %c1_19, %c0_20], %28 {strides = array<i32>} : memref<10x16x8xf32, #tpu.memory_space<vmem>>, vector<1x15x8xf32>,
    %30 = vector.extract_strided_slice %27 {offsets = [1, 0, 0], sizes = [1, 15, 8], strides = [1, 1, 1]} : vector<2x15x8xf32> to vector<1x15x8xf32>
    %c9 = arith.constant 9 : index
    %c1_21 = arith.constant 1 : index
    %c0_22 = arith.constant 0 : index
    %31 = vector.load %arg8[%c9, %c1_21, %c0_22] : memref<10x16x8xf32, #tpu.memory_space<vmem>>, vector<1x15x8xf32>
    tpu.vector_store %arg8[%c9, %c1_21, %c0_22], %30 {strides = array<i32>} : memref<10x16x8xf32, #tpu.memory_space<vmem>>, vector<1x15x8xf32>,
    %c0_i32 = arith.constant 0 : i32
    %32 = arith.cmpi eq, %arg1, %c0_i32 : i32
    %33 = arith.extui %32 : i1 to i32
    %c0_i32_23 = arith.constant 0 : i32
    %34 = arith.cmpi ne, %33, %c0_i32_23 : i32
    scf.if %34 {
      %c2_37 = arith.constant 2 : index
      %c1_38 = arith.constant 1 : index
      %c0_39 = arith.constant 0 : index
      %51 = vector.load %arg8[%c2_37, %c1_38, %c0_39] : memref<10x16x8xf32, #tpu.memory_space<vmem>>, vector<1x15x8xf32>
      %c0_40 = arith.constant 0 : index
      %c1_41 = arith.constant 1 : index
      %c0_42 = arith.constant 0 : index
      %52 = vector.load %arg8[%c0_40, %c1_41, %c0_42] : memref<10x16x8xf32, #tpu.memory_space<vmem>>, vector<1x15x8xf32>
      tpu.vector_store %arg8[%c0_40, %c1_41, %c0_42], %51 {strides = array<i32>} : memref<10x16x8xf32, #tpu.memory_space<vmem>>, vector<1x15x8xf32>,
    } else {
    }
    %c1_i32 = arith.constant 1 : i32
    %35 = arith.cmpi eq, %arg1, %c1_i32 : i32
    %36 = arith.extui %35 : i1 to i32
    %c0_i32_24 = arith.constant 0 : i32
    %37 = arith.cmpi ne, %36, %c0_i32_24 : i32
    scf.if %37 {
      %c7 = arith.constant 7 : index
      %c1_37 = arith.constant 1 : index
      %c0_38 = arith.constant 0 : index
      %51 = vector.load %arg8[%c7, %c1_37, %c0_38] : memref<10x16x8xf32, #tpu.memory_space<vmem>>, vector<1x15x8xf32>
      %c9_39 = arith.constant 9 : index
      %c1_40 = arith.constant 1 : index
      %c0_41 = arith.constant 0 : index
      %52 = vector.load %arg8[%c9_39, %c1_40, %c0_41] : memref<10x16x8xf32, #tpu.memory_space<vmem>>, vector<1x15x8xf32>
      tpu.vector_store %arg8[%c9_39, %c1_40, %c0_41], %51 {strides = array<i32>} : memref<10x16x8xf32, #tpu.memory_space<vmem>>, vector<1x15x8xf32>,
    } else {
    }
    %c0_25 = arith.constant 0 : index
    %c2 = arith.constant 2 : index
    %c0_26 = arith.constant 0 : index
    %38 = vector.load %arg8[%c0_25, %c2, %c0_26] : memref<10x16x8xf32, #tpu.memory_space<vmem>>, vector<10x1x8xf32>
    %c0_27 = arith.constant 0 : index
    %c0_28 = arith.constant 0 : index
    %c0_29 = arith.constant 0 : index
    %39 = vector.load %arg8[%c0_27, %c0_28, %c0_29] : memref<10x16x8xf32, #tpu.memory_space<vmem>>, vector<10x1x8xf32>
    tpu.vector_store %arg8[%c0_27, %c0_28, %c0_29], %38 {strides = array<i32>} : memref<10x16x8xf32, #tpu.memory_space<vmem>>, vector<10x1x8xf32>,
    %c0_30 = arith.constant 0 : index
    %c0_31 = arith.constant 0 : index
    %c0_32 = arith.constant 0 : index
    %40 = vector.load %arg8[%c0_30, %c0_31, %c0_32] : memref<10x16x8xf32, #tpu.memory_space<vmem>>, vector<10x16x8xf32>
    %41 = vector.extract_strided_slice %40 {offsets = [0, 0, 0], sizes = [8, 16, 8], strides = [1, 1, 1]} : vector<10x16x8xf32> to vector<8x16x8xf32>
    %42 = vector.extract_strided_slice %40 {offsets = [1, 0, 0], sizes = [8, 16, 8], strides = [1, 1, 1]} : vector<10x16x8xf32> to vector<8x16x8xf32>
    %43 = vector.extract_strided_slice %40 {offsets = [2, 0, 0], sizes = [8, 16, 8], strides = [1, 1, 1]} : vector<10x16x8xf32> to vector<8x16x8xf32>
    %44 = tpu.concatenate %41, %42, %43 in 2 : vector<8x16x8xf32>, vector<8x16x8xf32>, vector<8x16x8xf32> -> vector<8x16x24xf32>
    %45 = vector.shape_cast %44 : vector<8x16x24xf32> to vector<128x24xf32>
    %cst_33 = arith.constant dense<0.000000e+00> : vector<128x8xf32>
    %46 = tpu.matmul %45, %1, %cst_33 {dimension_numbers = #tpu.dot_dimension_numbers<[1], [0], [0], [1], [0, 0, 1, 1], [], []>} : vector<128x24xf32>, vector<24x8xf32>, vector<128x8xf32> -> vector<128x8xf32>
    %47 = tpu.transpose %46, [1, 0] : vector<128x8xf32> -> vector<8x128xf32>
    %c0_34 = arith.constant 0 : index
    %c0_35 = arith.constant 0 : index
    %c0_36 = arith.constant 0 : index
    %48 = vector.load %arg7[%c0_34, %c0_35, %c0_36] : memref<1x8x128xf32, #tpu.memory_space<vmem>>, vector<1x8x128xf32>
    %49 = vector.shape_cast %48 : vector<1x8x128xf32> to vector<8x128xf32>
    %50 = vector.shape_cast %47 : vector<8x128xf32> to vector<1x8x128xf32>
    tpu.vector_store %arg7[%c0_34, %c0_35, %c0_36], %50 {strides = array<i32>} : memref<1x8x128xf32, #tpu.memory_space<vmem>>, vector<1x8x128xf32>,
    return
  }
  func.func @transform_0(%arg0: i32, %arg1: i32) -> (i32, i32, i32, i32) {
    %c0_i32 = arith.constant 0 : i32
    %c0_i32_0 = arith.constant 0 : i32
    %c0_i32_1 = arith.constant 0 : i32
    return %arg0, %arg1, %c0_i32, %c0_i32_0 : i32, i32, i32, i32
  }
  func.func @transform_1(%arg0: i32, %arg1: i32) -> (i32, i32, i32, i32) {
    %c8_i32 = arith.constant 8 : i32
    %0 = arith.muli %arg1, %c8_i32 : i32
    %c1_i32 = arith.constant 1 : i32
    %1 = arith.subi %0, %c1_i32 : i32
    %c0_i32 = arith.constant 0 : i32
    %2 = arith.maxsi %1, %c0_i32 : i32
    %c0_i32_0 = arith.constant 0 : i32
    %c0_i32_1 = arith.constant 0 : i32
    %c0_i32_2 = arith.constant 0 : i32
    return %arg0, %2, %c0_i32_0, %c0_i32_1 : i32, i32, i32, i32
  }
  func.func @transform_2(%arg0: i32, %arg1: i32) -> (i32, i32, i32, i32) {
    %c1_i32 = arith.constant 1 : i32
    %0 = arith.addi %arg1, %c1_i32 : i32
    %c8_i32 = arith.constant 8 : i32
    %1 = arith.muli %0, %c8_i32 : i32
    %c15_i32 = arith.constant 15 : i32
    %2 = arith.minsi %1, %c15_i32 : i32
    %c0_i32 = arith.constant 0 : i32
    %c0_i32_0 = arith.constant 0 : i32
    %c0_i32_1 = arith.constant 0 : i32
    return %arg0, %2, %c0_i32, %c0_i32_0 : i32, i32, i32, i32
  }
  func.func @transform_3(%arg0: i32, %arg1: i32) -> (i32, i32) {
    %c0_i32 = arith.constant 0 : i32
    %c0_i32_0 = arith.constant 0 : i32
    %c0_i32_1 = arith.constant 0 : i32
    return %c0_i32, %c0_i32_0 : i32, i32
  }
  func.func @transform_4(%arg0: i32, %arg1: i32) -> (i32, i32) {
    %c0_i32 = arith.constant 0 : i32
    %c0_i32_0 = arith.constant 0 : i32
    %c0_i32_1 = arith.constant 0 : i32
    return %c0_i32, %c0_i32_0 : i32, i32
  }
  func.func @transform_5(%arg0: i32, %arg1: i32) -> (i32, i32, i32) {
    %c0_i32 = arith.constant 0 : i32
    %c0_i32_0 = arith.constant 0 : i32
    return %arg0, %c0_i32, %arg1 : i32, i32, i32
  }
}

</mosaic_0001>

<bundles_post_ra>
// kernel: fcb_no_act.1
= control target key start
LH: loop header
LB: loop body
LE: loop exit
PB: predicated region body
PF: predicated region fallthrough
CT: control target
= control target key end

     0   :  { %s5766_s18 = smov 0   ;;  %s5768_s19 = smov 0   ;;  %s7184_s0 = inlined_call_operand.vmem [shape: f32[2,16,16,4], index: 0, kind: input, shape index: {}, may-alias: {0,1,2}]   ;;  %s7185_s1 = inlined_call_operand.vmem [shape: f32[2,16,16,4], index: 1, kind: input, shape index: {}, may-alias: {0,1,2}]   ;;  %s7186_s2 = inlined_call_operand.vmem [shape: f32[2,16,16,4], index: 2, kind: input, shape index: {}, may-alias: {0,1,2}]   ;;  %s7187_s3 = inlined_call_operand.vmem [shape: f32[12,8], index: 3, kind: input, shape index: {}]   ;;  %s7188_s4 = inlined_call_operand.vmem [shape: f32[24,8], index: 4, kind: input, shape index: {}]   ;;  %s7189_s5 = inlined_call_operand.vmem [shape: f32[2,8,256], index: 5, kind: output, shape index: {}]  }
   0x1   :  { %s5770_s20 = smov 0   ;;  %s5772_s21 = smov 0  }
   0x2   :  { %s5774_s22 = smov 0  }
   0x3 LB: > { %s24_s23 = sadd.s32 1, %s5720_s20  ;;  %s27_s24 = sadd.s32 1, %s5724_s21  ;;  %s5728_s22 = sphi %s5774_s22, %s15_s22   ;;  %s5724_s21 = sphi %s5772_s21, %s7194_s21   ;;  %s5720_s20 = sphi %s5770_s20, %s7193_s20   ;;  %s5716_s19 = sphi %s5768_s19, %s7192_s19   ;;  %s5712_s18 = sphi %s5766_s18, %s7191_s18  }
   0x4   : > { %p25_p0 = scmp.ge.s32.totalorder %s24_s23, 2  ;;  %p5402_p1 = scmp.ge.s32.totalorder %s5728_s22, 1 }
   0x5   : > { %p273_p2 = scmp.lt.s32.totalorder %s5728_s22, 5 }
   0x6   : > { %s7196_s23 = smov (%p25_p0, %s24_s23), 0  ;;  %s7198_s24 = smov (!%p25_p0, %s27_s24), %s5724_s21 }
   0x7   : > { %p274_p3 = pnand %p5402_p1, %p273_p2  ;;  %p29_p4 = scmp.ge.s32.totalorder %s7198_s24, 2 }
   0x8   : > { %s5799_s25 = sshll.u32 (!%p274_p3), %s5712_s18, 3  ;;  %p336_p5 = scmp.lt.s32.totalorder (!%p274_p3), %s5716_s19, 1 }
   0x9   : > { %s7200_s24 = smov (%p29_p4, %s7198_s24), 0  ;;  %277 = sbr.rel (%p274_p3) target bundleno = 973 (0x3cd), region = 40 }
   0xa   : > { %p338_p6 = scmp.lt.s32.totalorder (!%p274_p3), %s5799_s25, 15  ;;  %p382_p7 = scmp.lt.s32.totalorder (!%p274_p3), %s5712_s18, 1 }
   0xb   : > { %s5730_s13 = smov (!%p274_p3), 4   ;;  %s5731_s17 = smov (!%p274_p3), 8  }
   0xc   : > { %p5479_p11 = scmp.ne.s32.totalorder (!%p274_p3), %s5712_s18, 0 }
   0xe   : > { %s7202_s19 = smov (!%p336_p5, %s5716_s19), 1  ;;  %vm425_vm0 = vcmask 1045504   ;;  %vm466_vm1 = vcmask 1046528   ;;  %v389_v33 = vld [vmem:[%s7187_s3 + $0x8] sm:$0xf]  ;;  %vm2187_vm2 = vcmask 1043456  }
   0xf   : > { %s339_s26 = scalar_select %p338_p6, %s5799_s25, 15  ;;  %v5732_v37 = vmov 0.0   ;;  %v388_v39 = vld [vmem:[%s7187_s3] sm:$0xff]  ;;  %vm5733_vm3 = vmmov 0   ;;  %v5951_v53 = vld [vmem:[%s7188_s4 + $0x8] sm:$0xff]  ;;  %v5956_v54 = vld [vmem:[%s7188_s4 + $0x10] sm:$0xff] }
  0x10   : > { %s5803_s27 = sshll.u32 %s7202_s19, 5  ;;  %s5424_s6 = sshll.u32 %s7202_s19, 1  ;;  %5549 = vmatprep.subr.mxu0 %v5732_v37  ;;  %5638 = vmatprep.subr.mxu1 %v5732_v37  ;;  %v5946_v52 = vld [vmem:[%s7188_s4] sm:$0xff]  ;;  %vm595_vm4 = vcmask 31744   ;;  %vm612_vm5 = vcmask 64512   ;;  %vm2156_vm6 = vcmask 97280  }
  0x11   : > { %s5404_s28 = sshll.u32 %s339_s26, 1  ;;  %s5881_s19 = sadd.s32 4294967295, %s5799_s25  ;;  %5550 = vmatpush3.msk.msra.mxu0 %vm2187_vm2, %v389_v33  ;;  %5640 = vmatpush3.msk.msra.mxu1 %vm2187_vm2, %v389_v33  ;;  %vm3875_vm7 = vcmask 63488  }
  0x12   : > { %s342_s29 = sadd.s32 %s5803_s27, %s5404_s28  ;;  %p348_p8 = scmp.gt.s32.totalorder %s5881_s19, 0  ;;  %5551 = vmatprep.subr.mxu0 %v5732_v37  ;;  %5553 = vmatprep.mubr.msk.f32.mxu0 %vm5733_vm3, %v5732_v37 }
  0x13   : > { %s5406_s30 = sshll.u32 %s342_s29, 3  ;;  %p5409_p9 = scmp.lt.s32.totalorder %s5881_s19, 15  ;;  %5552 = vmatpush3.msra.mxu0 %v388_v39  ;;  %5639 = vmatprep.subr.mxu1 %v5732_v37 }
  0x14   : > { %s5810_s9 = scalar_lea.vmem %s7184_s0, %s5406_s30  ;;  %5641 = vmatpush3.msra.mxu1 %v388_v39  ;;  %5592 = vmatprep.mubr.msk.f32.mxu1 %vm5733_vm3, %v5732_v37 }
  0x15   : > { %s383_s10 = scalar_select %p382_p7, %s5712_s18, 1  ;;  %v5814_v0 = vld [vmem:[%s5810_s9 + $0x18] sm:$0xff]  ;;  %v5817_v1 = vld [vmem:[%s5810_s9 + $0x8] sm:$0xff]  ;;  %v5820_v2 = vld [vmem:[%s5810_s9] sm:$0xff]  ;;  %5598 = vmatprep.subr.msk.mxu1 %vm2187_vm2, %v389_v33 }
  0x16   : > { %v471_v3 = vrot.slane %v5814_v0, 1  ;;  %v468_v4 = vrot.slane %v5817_v1, 1  ;;  %v427_v5 = vrot.slane %v5817_v1, 2  ;;  %v467_v6 = vrot.slane %v5820_v2, 1  ;;  %v5827_v7 = vld [vmem:[%s5810_s9 + $0x10] sm:$0xff]  ;;  %v5848_v16 = vld [vmem:[%s5810_s9 + $0x20] sm:$0xff] }
  0x17   : > { %s385_s11 = sadd.s32 %s5424_s6, %s383_s10  ;;  %v429_v8 = vrot.slane %v5827_v7, 2  ;;  %v430_v11 = vrot.slane %v5814_v0, 2  ;;  %v426_v12 = vrot.slane %v5820_v2, 2  ;;  %v470_v15 = vrot.slane %v5827_v7, 1  ;;  %v5851_v17 = vld [vmem:[%s5810_s9 + $0x28] sm:$0xff]  ;;  %v5867_v26 = vld [vmem:[%s5810_s9 + $0x30] sm:$0xff] }
  0x18   : > { %s5425_s12 = sshll.u32 %s385_s11, 3  ;;  %497 = vrot.lane.b32.xlu0 %v471_v3, %s5730_s13  ;;  %493 = vrot.lane.b32.xlu1 %v468_v4, %s5730_s13  ;;  %v458_v9 = vsel %vm425_vm0, %v427_v5, %v5817_v1  ;;  %v469_v10 = vsel %vm466_vm1, %v467_v6, %v468_v4  ;;  %v432_v18 = vrot.slane %v5848_v16, 2  ;;  %v433_v19 = vrot.slane %v5851_v17, 2  ;;  %v5870_v27 = vld [vmem:[%s5810_s9 + $0x38] sm:$0xff]  ;;  %v5891_v36 = vld [vmem:[%s5810_s9 + $0x40] sm:$0xff]  ;;  %s5506_s6 = sadd.s32 8, %s5799_s25 }
  0x19   : > { %s5835_s16 = scalar_lea.vmem %s7189_s5, %s5425_s12  ;;  %v431_v13 = vsel %vm425_vm0, %v429_v8, %v430_v11  ;;  %v428_v14 = vsel %vm425_vm0, %v426_v12, %v427_v5  ;;  %v459_v20 = vsel %vm425_vm0, %v430_v11, %v5814_v0  ;;  %v472_v21 = vsel %vm466_vm1, %v470_v15, %v471_v3  ;;  %v5896_v38 = vld [vmem:[%s5810_s9 + $0x48] sm:$0xff]  ;;  %v5919_v45 = vld [vmem:[%s5810_s9 + $0x70] sm:$0xff]  ;;  %v5922_v46 = vld [vmem:[%s5810_s9 + $0x78] sm:$0xff]  ;;  %p5939_p10 = scmp.lt.s32.totalorder %s5506_s6, 15 }
  0x1a   : > { %v473_v22 = vrot.slane %v5848_v16, 1  ;;  %v474_v23 = vrot.slane %v5851_v17, 1  ;;  %v434_v24 = vsel %vm425_vm0, %v432_v18, %v433_v19  ;;  %v460_v28 = vsel %vm425_vm0, %v433_v19, %v5851_v17  ;;  %s349_s7 = scalar_select %p348_p8, %s5881_s19, 0  ;;  %v5933_v47 = vld [vmem:[%s5810_s9 + $0x68] sm:$0xff]  ;;  %v5980_v62 = vld [vmem:[%s5810_s9 + $0x50] sm:$0xff]  ;;  %v5983_v63 = vld [vmem:[%s5810_s9 + $0x58] sm:$0xff] }
  0x1b   : > { %v435_v29 = vrot.slane %v5867_v26, 2  ;;  %v436_v30 = vrot.slane %v5870_v27, 2  ;;  %v476_v31 = vrot.slane %v5867_v26, 1  ;;  %v477_v32 = vrot.slane %v5870_v27, 1  ;;  %s7206_s6 = smov (!%p5939_p10, %s5506_s6), 15 }
  0x1c   : > { %549 = vrot.lane.b32.xlu1 %v458_v9, %s5731_s17  ;;  %491 = vrot.lane.b32.xlu0 %v469_v10, %s5730_s13  ;;  %v475_v25 = vsel %vm466_vm1, %v473_v22, %v474_v23  ;;  %v438_v40 = vrot.slane %v5891_v36, 2  ;;  %v439_v42 = vrot.slane %v5896_v38, 2  ;;  %v479_v43 = vrot.slane %v5891_v36, 1  ;;  %s7204_s7 = smov (!%p5409_p9, %s349_s7), 15  ;;  %s7208_s6 = smov (!%p5939_p10, %s7206_s6), 15 }
  0x1d   : > { %v437_v34 = vsel %vm425_vm0, %v435_v29, %v436_v30  ;;  %v478_v35 = vsel %vm466_vm1, %v476_v31, %v477_v32  ;;  %v461_v41 = vsel %vm425_vm0, %v436_v30, %v5870_v27  ;;  %v480_v44 = vrot.slane %v5896_v38, 1  ;;  %s5414_s19 = sshll.u32 %s7204_s7, 1  ;;  %s5421_s29 = sshll.u32 %s7208_s6, 1 }
  0x1e   : > { %v440_v48 = vsel %vm425_vm0, %v438_v40, %v439_v42  ;;  %v488_v50 = vrot.slane %v5919_v45, 1  ;;  %v489_v51 = vrot.slane %v5922_v46, 1  ;;  %v486_v55 = vrot.slane %v5933_v47, 1  ;;  %s356_s26 = sadd.s32 %s5414_s19, %s5803_s27  ;;  %s373_s25 = sadd.s32 %s5421_s29, %s5803_s27 }
  0x1f   : > { %v481_v49 = vsel %vm466_vm1, %v479_v43, %v480_v44  ;;  %v447_v57 = vrot.slane %v5919_v45, 2  ;;  %v448_v58 = vrot.slane %v5922_v46, 2  ;;  %v445_v59 = vrot.slane %v5933_v47, 2  ;;  %s5416_s28 = sshll.u32 %s356_s26, 3  ;;  %s5423_s6 = sshll.u32 %s373_s25, 3 }
  0x20   : > { %551 = vrot.lane.b32.xlu1 %v431_v13, %s5731_s17  ;;  %547 = vrot.lane.b32.xlu0 %v428_v14, %s5731_s17  ;;  %v490_v56 = vsel %vm466_vm1, %v488_v50, %v489_v51  ;;  %v462_v3 = vsel %vm425_vm0, %v439_v42, %v5896_v38  ;;  %v482_v4 = vrot.slane %v5980_v62, 1  ;;  %v483_v5 = vrot.slane %v5983_v63, 1  ;;  %s358_s8 = scalar_lea.vmem %s7185_s1, %s5416_s28  ;;  %s375_s11 = scalar_lea.vmem %s7186_s2, %s5423_s6 }
  0x21   : > { %v449_v60 = vsel %vm425_vm0, %v447_v57, %v448_v58  ;;  %v464_v61 = vsel %vm425_vm0, %v445_v59, %v5933_v47  ;;  %v441_v8 = vrot.slane %v5980_v62, 2  ;;  %v442_v9 = vrot.slane %v5983_v63, 2  ;;  %v6002_v10 = vld [vmem:[%s358_s8] sm:$0xff]  ;;  %v6004_v11 = vld [vmem:[%s358_s8 + $0x8] sm:$0xff] }
  0x22   : > { %v484_v6 = vsel %vm466_vm1, %v482_v4, %v483_v5  ;;  %v465_v12 = vsel %vm425_vm0, %v448_v58, %v5922_v46  ;;  %v3909_v14 = vrot.slane %v6002_v10, 1  ;;  %v3910_v15 = vrot.slane %v6004_v11, 1  ;;  %v6023_v22 = vld [vmem:[%s375_s11 + $0x8] sm:$0xff] }
  0x23   : > { %v443_v13 = vsel %vm425_vm0, %v441_v8, %v442_v9  ;;  %v3899_v19 = vrot.slane %v6002_v10, 2  ;;  %v463_v29 = vsel %vm425_vm0, %v442_v9, %v5983_v63  ;;  %v3903_v31 = vrot.slane %v6023_v22, 2 }
  0x24   : > { %553 = vrot.lane.b32.xlu1 %v459_v20, %s5731_s17  ;;  %495 = vrot.lane.b32.xlu0 %v472_v21, %s5730_s13  ;;  %v3911_v18 = vsel %vm466_vm1, %v3909_v14, %v3910_v15  ;;  %v3900_v20 = vrot.slane %v6004_v11, 2  ;;  %v6021_v21 = vld [vmem:[%s375_s11] sm:$0xff]  ;;  %v5734_v43 = vmov 1966171168  }
  0x25   : > { %v3902_v30 = vrot.slane %v6021_v21, 2 }
  0x27   : > { %v3904_v33 = vsel %vm425_vm0, %v3902_v30, %v3903_v31 }
  0x28   : > { %555 = vrot.lane.b32.xlu1 %v434_v24, %s5731_s17  ;;  %499 = vrot.lane.b32.xlu0 %v475_v25, %s5730_s13  ;;  %v3912_v24 = vrot.slane %v6021_v21, 1  ;;  %v3913_v25 = vrot.slane %v6023_v22, 1 }
  0x2c   : > { %557 = vrot.lane.b32.xlu1 %v460_v28, %s5731_s17  ;;  %501 = vrot.lane.b32.xlu0 %v474_v23, %s5730_s13  ;;  %v3901_v23 = vsel %vm425_vm0, %v3899_v19, %v3900_v20  ;;  %v3914_v28 = vsel %vm466_vm1, %v3912_v24, %v3913_v25 }
  0x30   : > { %559 = vrot.lane.b32.xlu1 %v437_v34, %s5731_s17  ;;  %503 = vrot.lane.b32.xlu0 %v478_v35, %s5730_s13  ;;  %v3907_v34 = vsel %vm425_vm0, %v3900_v20, %v6004_v11 }
  0x34   : > { %561 = vrot.lane.b32.xlu1 %v461_v41, %s5731_s17  ;;  %505 = vrot.lane.b32.xlu0 %v477_v32, %s5730_s13  ;;  %v6038_v32 = vld [vmem:[%s5810_s9 + $0x60] sm:$0xff]  ;;  %v3908_v41 = vsel %vm425_vm0, %v3903_v31, %v6023_v22 }
  0x35   : > { %v485_v35 = vrot.slane %v6038_v32, 1  ;;  %v444_v40 = vrot.slane %v6038_v32, 2 }
  0x37   : > { %v487_v39 = vsel %vm466_vm1, %v485_v35, %v486_v55  ;;  %v446_v42 = vsel %vm425_vm0, %v444_v40, %v445_v59 }
  0x38   : > { %563 = vrot.lane.b32.xlu1 %v440_v48, %s5731_s17  ;;  %507 = vrot.lane.b32.xlu0 %v481_v49, %s5730_s13  ;;  %v649_v48 = vlaneseq }
  0x3a   : > { %v650_v50 = vshrl.u32 %v649_v48, 7 }
  0x3c   : > { %519 = vrot.lane.b32.xlu1 %v490_v56, %s5730_s13  ;;  %517 = vrot.lane.b32.xlu0 %v486_v55, %s5730_s13 }
  0x40   : > { %575 = vrot.lane.b32.xlu1 %v449_v60, %s5731_s17  ;;  %573 = vrot.lane.b32.xlu0 %v464_v61, %s5731_s17 }
  0x44   : > { %565 = vrot.lane.b32.xlu1 %v462_v3, %s5731_s17  ;;  %509 = vrot.lane.b32.xlu0 %v480_v44, %s5730_s13  ;;  %v647_v44 = vunpack.c.l.s4 %v5734_v43 }
  0x46   : > { %v648_v49 = vunpack.c.0.s8 %v647_v44 }
  0x48   : > { %521 = vrot.lane.b32.xlu1 %v489_v51, %s5730_s13  ;;  %511 = vrot.lane.b32.xlu0 %v484_v6, %s5730_s13  ;;  %v6061_v56 = vsub.s32 %v648_v49, %v650_v50 }
  0x4c   : > { %577 = vrot.lane.b32.xlu1 %v465_v12, %s5731_s17  ;;  %567 = vrot.lane.b32.xlu0 %v443_v13, %s5731_s17 }
  0x50   : > { %513 = vrot.lane.b32.xlu1 %v483_v5, %s5730_s13  ;;  %3915 = vrot.lane.b32.xlu0 %v3911_v18, %s5730_s13 }
  0x54   : > { %3929 = vrot.lane.b32.xlu1 %v3901_v23, %s5731_s17  ;;  %3917 = vrot.lane.b32.xlu0 %v3910_v15, %s5730_s13 }
  0x58   : > { %3919 = vrot.lane.b32.xlu1 %v3914_v28, %s5730_s13  ;;  %569 = vrot.lane.b32.xlu0 %v463_v29, %s5731_s17 }
  0x5c   : > { %3933 = vrot.lane.b32.xlu1 %v3904_v33, %s5731_s17  ;;  %3931 = vrot.lane.b32.xlu0 %v3907_v34, %s5731_s17 }
  0x60   : > { %3921 = vrot.lane.b32.xlu1 %v3913_v25, %s5730_s13  ;;  %515 = vrot.lane.b32.xlu0 %v487_v39, %s5730_s13 }
  0x64   : > { %3935 = vrot.lane.b32.xlu1 %v3908_v41, %s5731_s17  ;;  %571 = vrot.lane.b32.xlu0 %v446_v42, %s5731_s17 }
  0x8a   : > { %v498_v51 = vpop.permute.xlu0 %497  ;;  %v494_v55 = vpop.permute.xlu1 %493 }
  0x8b   : > { %v597_v57 = vsel %vm595_vm4, %v5817_v1, %v494_v55  ;;  %v599_v20 = vsel %vm595_vm4, %v5814_v0, %v498_v51 }
  0x8e   : > { %v550_v58 = vpop.permute.xlu1 %549  ;;  %v492_v59 = vpop.permute.xlu0 %491 }
  0x8f   : > { %v614_v60 = vsel %vm612_vm5, %v597_v57, %v550_v58  ;;  %v596_v6 = vsel %vm595_vm4, %v5820_v2, %v492_v59 }
  0x90   : > { %v694_v61 = vcombine.high %v614_v60, %v614_v60  ;;  %v701_v3 = vrot.slane %v614_v60, %v6061_v56 }
  0x92   : > { %v708_v4 = vrot.slane %v694_v61, %v6061_v56  ;;  %v709_v5 = vcombine.high %v701_v3, %v701_v3  ;;  %v552_v8 = vpop.permute.xlu1 %551  ;;  %v548_v9 = vpop.permute.xlu0 %547  ;;  %v717_v12 = vrot.slane %v701_v3, %v6061_v56 }
  0x93   : > { %v613_v13 = vsel %vm612_vm5, %v596_v6, %v548_v9 }
  0x94   : > { %v710_v1 = vcombine.high %v708_v4, %v708_v4  ;;  %v6073_v14 = vrot.slane %v708_v4, %v6061_v56  ;;  %v731_v15 = vrot.slane %v709_v5, %v6061_v56  ;;  %v645_v18 = vcombine.high %v613_v13, %v613_v13 }
  0x95   : > { %v652_v19 = vrot.slane %v613_v13, %v6061_v56 }
  0x96   : > { %v738_v2 = vrot.slane %v710_v1, %v6061_v56  ;;  %v1470_v23 = vcombine.low %v717_v12, %v731_v15  ;;  %v5428_v24 = vcombine.high %v717_v12, %v731_v15  ;;  %v554_v25 = vpop.permute.xlu1 %553  ;;  %v496_v28 = vpop.permute.xlu0 %495  ;;  %v659_v29 = vrot.slane %v645_v18, %v6061_v56 }
  0x97   : > { %v660_v30 = vcombine.high %v652_v19, %v652_v19  ;;  %v616_v31 = vsel %vm612_vm5, %v599_v20, %v554_v25  ;;  %v740_v33 = vcombine.high %v6073_v14, %v6073_v14  ;;  %v668_v35 = vrot.slane %v652_v19, %v6061_v56 }
  0x98   : > { %v1472_v34 = vcombine.low %v6073_v14, %v738_v2  ;;  %v791_v39 = vcombine.high %v616_v31, %v616_v31  ;;  %v6087_v0 = vrot.slane %v1470_v23, %v6061_v56  ;;  %v661_v40 = vcombine.high %v659_v29, %v659_v29 }
  0x99   : > { %v682_v41 = vrot.slane %v660_v30, %v6061_v56  ;;  %v798_v42 = vrot.slane %v616_v31, %v6061_v56  ;;  %v6092_v43 = vrot.slane %v5428_v24, %v6061_v56  ;;  %v675_v44 = vrot.slane %v659_v29, %v6061_v56 }
  0x9a   : > { %v805_v48 = vrot.slane %v791_v39, %v6061_v56  ;;  %v598_v49 = vsel %vm595_vm4, %v5827_v7, %v496_v28  ;;  %v556_v50 = vpop.permute.xlu1 %555  ;;  %v500_v51 = vpop.permute.xlu0 %499  ;;  %v689_v55 = vrot.slane %v661_v40, %v6061_v56  ;;  %v6111_v15 = vrot.slane %v1472_v34, %v6061_v56 }
  0x9b   : > { %v1421_v57 = vcombine.low %v668_v35, %v682_v41  ;;  %v5426_v58 = vcombine.high %v668_v35, %v682_v41  ;;  %v806_v59 = vcombine.high %v798_v42, %v798_v42  ;;  %v814_v61 = vrot.slane %v798_v42, %v6061_v56 }
  0x9c   : > { %v807_v60 = vcombine.high %v805_v48, %v805_v48  ;;  %v821_v3 = vrot.slane %v805_v48, %v6061_v56  ;;  %v615_v4 = vsel %vm612_vm5, %v598_v49, %v552_v8  ;;  %v1423_v5 = vcombine.low %v675_v44, %v689_v55 }
  0x9d   : > { %v5427_v6 = vcombine.high %v675_v44, %v689_v55  ;;  %v6103_v9 = vrot.slane %v1421_v57, %v6061_v56  ;;  %v6106_v7 = vrot.slane %v5426_v58, %v6061_v56  ;;  %v828_v12 = vrot.slane %v806_v59, %v6061_v56 }
  0x9e   : > { %v835_v13 = vrot.slane %v807_v60, %v6061_v56  ;;  %v836_v1 = vcombine.high %v814_v61, %v814_v61  ;;  %v837_v14 = vcombine.high %v821_v3, %v821_v3  ;;  %v6114_v18 = vrot.slane %v1423_v5, %v6061_v56  ;;  %v502_v20 = vpop.permute.xlu0 %501  ;;  %v558_v28 = vpop.permute.xlu1 %557 }
  0x9f   : > { %v6117_v8 = vrot.slane %v5427_v6, %v6061_v56  ;;  %v742_v19 = vcombine.high %v615_v4, %v615_v4  ;;  %v1502_v2 = vcombine.low %v6087_v0, %v6092_v43  ;;  %v838_v23 = vcombine.high %v828_v12, %v828_v12 }
  0xa0   : > { %v6121_v24 = vcombine.low %v828_v12, %v836_v1  ;;  %v749_v25 = vrot.slane %v615_v4, %v6061_v56  ;;  %v1453_v29 = vcombine.low %v6103_v9, %v6106_v7  ;;  %v6126_v30 = vcombine.low %v835_v13, %v837_v14 }
  0xa1   : > { %v756_v31 = vrot.slane %v742_v19, %v6061_v56  ;;  %v600_v34 = vsel %vm595_vm4, %v5848_v16, %v500_v51  ;;  %v6131_v35 = vcombine.low %v838_v23, %v821_v3  ;;  %v601_v40 = vsel %vm595_vm4, %v5851_v17, %v502_v20 }
  0xa2   : > { %v757_v39 = vcombine.high %v749_v25, %v749_v25  ;;  %v1454_v41 = vcombine.low %v6114_v18, %v6117_v8  ;;  %v765_v44 = vrot.slane %v749_v25, %v6061_v56  ;;  %v617_v49 = vsel %vm612_vm5, %v600_v34, %v556_v50  ;;  %v560_v6 = vpop.permute.xlu1 %559  ;;  %v504_v9 = vpop.permute.xlu0 %503 }
  0xa3   : > { %v758_v42 = vcombine.high %v756_v31, %v756_v31  ;;  %v772_v48 = vrot.slane %v756_v31, %v6061_v56  ;;  %v1578_v55 = vrot.slane %v6121_v24, %v6061_v56  ;;  %v839_v51 = vcombine.high %v617_v49, %v617_v49 }
  0xa4   : > { %v779_v16 = vrot.slane %v757_v39, %v6061_v56  ;;  %v846_v57 = vrot.slane %v617_v49, %v6061_v56  ;;  %v787_v58 = vcombine.high %v765_v44, %v765_v44  ;;  %v6145_v60 = vcombine.low %v740_v33, %v765_v44 }
  0xa5   : > { %v786_v17 = vrot.slane %v758_v42, %v6061_v56  ;;  %v788_v59 = vcombine.high %v772_v48, %v772_v48  ;;  %v1592_v3 = vrot.slane %v6126_v30, %v6061_v56  ;;  %v853_v50 = vrot.slane %v839_v51, %v6061_v56 }
  0xa6   : > { %v789_v4 = vcombine.high %v779_v16, %v779_v16  ;;  %v854_v5 = vcombine.high %v846_v57, %v846_v57  ;;  %v1585_v7 = vrot.slane %v6131_v35, %v6061_v56  ;;  %v6152_v13 = vcombine.low %v779_v16, %v787_v58 }
  0xa7   : > { %v790_v12 = vcombine.high %v786_v17, %v786_v17  ;;  %v862_v1 = vrot.slane %v846_v57, %v6061_v56  ;;  %v1501_v33 = vrot.slane %v6145_v60, %v6061_v56  ;;  %v855_v18 = vcombine.high %v853_v50, %v853_v50  ;;  %v506_v57 = vpop.permute.xlu0 %505 }
  0xa8   : > { %v6157_v14 = vcombine.low %v789_v4, %v772_v48  ;;  %v876_v8 = vrot.slane %v854_v5, %v6061_v56  ;;  %v6160_v19 = vcombine.low %v786_v17, %v788_v59  ;;  %v869_v20 = vrot.slane %v853_v50, %v6061_v56 }
  0xa9   : > { %v618_v23 = vsel %vm612_vm5, %v601_v40, %v558_v28  ;;  %v602_v25 = vsel %vm595_vm4, %v5867_v26, %v504_v9  ;;  %v6166_v31 = vcombine.low %v790_v12, %v814_v61  ;;  %v883_v34 = vrot.slane %v855_v18, %v6061_v56  ;;  %v562_v61 = vpop.permute.xlu1 %561 }
  0xaa   : > { %v1571_v39 = vcombine.low %v862_v1, %v876_v8  ;;  %v5429_v42 = vcombine.high %v862_v1, %v876_v8  ;;  %v1529_v44 = vrot.slane %v6152_v13, %v6061_v56  ;;  %v888_v48 = vcombine.high %v618_v23, %v618_v23 }
  0xab   : > { %v895_v49 = vrot.slane %v618_v23, %v6061_v56  ;;  %v619_v16 = vsel %vm612_vm5, %v602_v25, %v560_v6  ;;  %v1536_v28 = vrot.slane %v6157_v14, %v6061_v56  ;;  %v1618_v26 = vcombine.low %v869_v20, %v883_v34 }
  0xac   : > { %v6176_v40 = vrot.slane %v1571_v39, %v6061_v56  ;;  %v1461_v51 = vrot.slane %v1453_v29, %v6061_v56  ;;  %v5430_v17 = vcombine.high %v869_v20, %v883_v34  ;;  %v902_v58 = vrot.slane %v888_v48, %v6061_v56 }
  0xad   : > { %v903_v59 = vcombine.high %v895_v49, %v895_v49  ;;  %v936_v60 = vcombine.high %v619_v16, %v619_v16  ;;  %v6181_v4 = vrot.slane %v5429_v42, %v6061_v56  ;;  %v911_v50 = vrot.slane %v895_v49, %v6061_v56 }
  0xae   : > { %v943_v5 = vrot.slane %v619_v16, %v6061_v56  ;;  %v1468_v6 = vrot.slane %v1454_v41, %v6061_v56  ;;  %v904_v9 = vcombine.high %v902_v58, %v902_v58  ;;  %v918_v12 = vrot.slane %v902_v58, %v6061_v56  ;;  %v564_v58 = vpop.permute.xlu1 %563 }
  0xaf   : > { %v925_v29 = vrot.slane %v903_v59, %v6061_v56  ;;  %v950_v1 = vrot.slane %v936_v60, %v6061_v56  ;;  %v603_v23 = vsel %vm595_vm4, %v5870_v27, %v506_v57  ;;  %v508_v59 = vpop.permute.xlu0 %507  ;;  %v6200_v27 = vrot.slane %v5430_v17, %v6061_v56 }
  0xb0   : > { %v951_v18 = vcombine.high %v943_v5, %v943_v5  ;;  %v959_v8 = vrot.slane %v943_v5, %v6061_v56  ;;  %v1469_v20 = vcombine.low %v1461_v51, %v1468_v6  ;;  %v932_v25 = vrot.slane %v904_v9, %v6061_v56 }
  0xb1   : > { %v1620_v34 = vcombine.low %v911_v50, %v925_v29  ;;  %v5431_v39 = vcombine.high %v911_v50, %v925_v29  ;;  %v934_v42 = vcombine.high %v918_v12, %v918_v12  ;;  %v952_v41 = vcombine.high %v950_v1, %v950_v1 }
  0xb2   : > { %v966_v48 = vrot.slane %v950_v1, %v6061_v56  ;;  %v973_v49 = vrot.slane %v951_v18, %v6061_v56  ;;  %v981_v16 = vcombine.high %v959_v8, %v959_v8  ;;  %5554 = vmatmul.mubr.msk.f32.vlgmr.msra.gmra.mxu0 %vm2156_vm6, %v1469_v20  ;;  %v6197_v51 = vrot.slane %v1618_v26, %v6061_v56 }
  0xb3   : > { %v1667_v57 = vcombine.low %v918_v12, %v932_v25  ;;  %v6202_v60 = vcombine.low %v934_v42, %v959_v8  ;;  %5556 = vmatprep.mubr.msk.f32.mxu0 %vm5733_vm3, %v5732_v37  ;;  %v980_v50 = vrot.slane %v952_v41, %v6061_v56  ;;  %v6210_v29 = vrot.slane %v1620_v34, %v6061_v56  ;;  %v520_v41 = vpop.permute.xlu1 %519 }
  0xb4   : > { %v982_v5 = vcombine.high %v966_v48, %v966_v48  ;;  %v983_v6 = vcombine.high %v973_v49, %v973_v49  ;;  %v6207_v9 = vcombine.low %v973_v49, %v981_v16  ;;  %v6213_v26 = vrot.slane %v5431_v39, %v6061_v56 }
  0xb5   : > { %v620_v17 = vsel %vm612_vm5, %v603_v23, %v562_v61  ;;  %v1503_v12 = vcombine.low %v6111_v15, %v1501_v33  ;;  %v6218_v1 = vrot.slane %v1667_v57, %v6061_v56  ;;  %v1690_v18 = vrot.slane %v6202_v60, %v6061_v56 }
  0xb6   : > { %v1697_v8 = vrot.slane %v6207_v9, %v6061_v56  ;;  %v6224_v20 = vcombine.low %v983_v6, %v966_v48  ;;  %v985_v25 = vcombine.high %v620_v17, %v620_v17  ;;  %v992_v34 = vrot.slane %v620_v17, %v6061_v56  ;;  %v518_v48 = vpop.permute.xlu0 %517 }
  0xb7   : > { %v1510_v61 = vrot.slane %v1502_v2, %v6061_v56  ;;  %v1517_v15 = vrot.slane %v1503_v12, %v6061_v56  ;;  %v6232_v33 = vcombine.low %v980_v50, %v982_v5  ;;  %v984_v39 = vcombine.high %v980_v50, %v980_v50 }
  0xb8   : > { %v1725_v23 = vrot.slane %v6224_v20, %v6061_v56  ;;  %v604_v42 = vsel %vm595_vm4, %v5891_v36, %v508_v59  ;;  %v999_v49 = vrot.slane %v985_v25, %v6061_v56  ;;  %v1000_v16 = vcombine.high %v992_v34, %v992_v34 }
  0xb9   : > { %v1008_v57 = vrot.slane %v992_v34, %v6061_v56  ;;  %v1518_v0 = vcombine.low %v1510_v61, %v1517_v15  ;;  %v621_v43 = vsel %vm612_vm5, %v604_v42, %v564_v58  ;;  %v1543_v2 = vrot.slane %v6160_v19, %v6061_v56 }
  0xba   : > { %v1550_v5 = vrot.slane %v6166_v31, %v6061_v56  ;;  %v1551_v36 = vcombine.low %v1529_v44, %v1536_v28  ;;  %v1001_v59 = vcombine.high %v999_v49, %v999_v49  ;;  %v1015_v50 = vrot.slane %v999_v49, %v6061_v56  ;;  %v574_v42 = vpop.permute.xlu0 %573 }
  0xbb   : > { %v1022_v6 = vrot.slane %v1000_v16, %v6061_v56  ;;  %v1030_v17 = vcombine.high %v1008_v57, %v1008_v57  ;;  %5557 = vmatmul.mubr.msk.f32.gmra.mxu0 %vm2156_vm6, %v1518_v0  ;;  %v6254_v58 = vcombine.low %v984_v39, %v1008_v57  ;;  %v1033_v19 = vcombine.high %v621_v43, %v621_v43  ;;  %v576_v39 = vpop.permute.xlu1 %575 }
  0xbc   : > { %v1040_v31 = vrot.slane %v621_v43, %v6061_v56  ;;  %5559 = vmatprep.mubr.msk.f32.mxu0 %vm5733_vm3, %v5732_v37  ;;  %v1552_v14 = vcombine.low %v1543_v2, %v1550_v5  ;;  %v610_v44 = vsel %vm595_vm4, %v5919_v45, %v520_v41  ;;  %v609_v28 = vsel %vm595_vm4, %v5933_v47, %v518_v48 }
  0xbd   : > { %v1032_v12 = vcombine.high %v1022_v6, %v1022_v6  ;;  %v6259_v13 = vcombine.low %v1022_v6, %v1030_v17  ;;  %v1029_v25 = vrot.slane %v1001_v59, %v6061_v56  ;;  %v1031_v34 = vcombine.high %v1015_v50, %v1015_v50 }
  0xbe   : > { %v1047_v61 = vrot.slane %v1033_v19, %v6061_v56  ;;  %v1048_v15 = vcombine.high %v1040_v31, %v1040_v31  ;;  %v1739_v49 = vrot.slane %v6254_v58, %v6061_v56  ;;  %v1056_v45 = vrot.slane %v1040_v31, %v6061_v56 }
  0xbf   : > { %v1746_v16 = vrot.slane %v6259_v13, %v6061_v56  ;;  %v6271_v57 = vcombine.low %v1032_v12, %v1015_v50  ;;  %v1559_v48 = vrot.slane %v1551_v36, %v6061_v56  ;;  %v1566_v0 = vrot.slane %v1552_v14, %v6061_v56 }
  0xc0   : > { %v1049_v41 = vcombine.high %v1047_v61, %v1047_v61  ;;  %v1070_v47 = vrot.slane %v1048_v15, %v6061_v56  ;;  %v1063_v43 = vrot.slane %v1047_v61, %v6061_v56  ;;  %v627_v2 = vsel %vm612_vm5, %v610_v44, %v576_v39 }
  0xc1   : > { %v1600_v5 = vcombine.low %v1578_v55, %v1585_v7  ;;  %v1601_v59 = vcombine.low %v1592_v3, %v6176_v40  ;;  %v1567_v17 = vcombine.low %v1559_v48, %v1566_v0  ;;  %v6290_v19 = vcombine.low %v1029_v25, %v1031_v34  ;;  %v566_v7 = vpop.permute.xlu1 %565  ;;  %v510_v40 = vpop.permute.xlu0 %509 }
  0xc2   : > { %v1077_v36 = vrot.slane %v1049_v41, %v6061_v56  ;;  %v1766_v50 = vcombine.low %v1056_v45, %v1070_v47  ;;  %v5432_v6 = vcombine.high %v1056_v45, %v1070_v47  ;;  %v1324_v31 = vcombine.high %v627_v2, %v627_v2 }
  0xc3   : > { %v1331_v14 = vrot.slane %v627_v2, %v6061_v56  ;;  %v1615_v35 = vrot.slane %v1601_v59, %v6061_v56  ;;  %v1774_v24 = vrot.slane %v6271_v57, %v6061_v56  ;;  %5560 = vmatmul.mubr.msk.f32.gmra.mxu0 %vm2156_vm6, %v1567_v17  ;;  %v1608_v3 = vrot.slane %v1600_v5, %v6061_v56 }
  0xc4   : > { %v6297_v55 = vrot.slane %v1766_v50, %v6061_v56  ;;  %v1813_v30 = vcombine.low %v1063_v43, %v1077_v36  ;;  %v6302_v12 = vrot.slane %v5432_v6, %v6061_v56  ;;  %5562 = vmatprep.mubr.msk.f32.mxu0 %vm5733_vm3, %v5732_v37  ;;  %v1338_v44 = vrot.slane %v1324_v31, %v6061_v56 }
  0xc5   : > { %v1339_v25 = vcombine.high %v1331_v14, %v1331_v14  ;;  %v1347_v34 = vrot.slane %v1331_v14, %v6061_v56  ;;  %v5433_v61 = vcombine.high %v1063_v43, %v1077_v36  ;;  %v1616_v15 = vcombine.low %v1608_v3, %v1615_v35  ;;  %v522_v31 = vpop.permute.xlu1 %521  ;;  %v512_v14 = vpop.permute.xlu0 %511 }
  0xc6   : > { %v626_v39 = vsel %vm612_vm5, %v609_v28, %v574_v42  ;;  %v1649_v45 = vcombine.low %v6181_v4, %v6197_v51  ;;  %v1340_v41 = vcombine.high %v1338_v44, %v1338_v44  ;;  %v1354_v47 = vrot.slane %v1338_v44, %v6061_v56 }
  0xc7   : > { %v1361_v48 = vrot.slane %v1339_v25, %v6061_v56  ;;  %v1369_v0 = vcombine.high %v1347_v34, %v1347_v34  ;;  %v6314_v2 = vrot.slane %v1813_v30, %v6061_v56  ;;  %5563 = vmatmul.mubr.msk.f32.gmra.mxu0 %vm2156_vm6, %v1616_v15  ;;  %v1276_v5 = vcombine.high %v626_v39, %v626_v39 }
  0xc8   : > { %v1283_v43 = vrot.slane %v626_v39, %v6061_v56  ;;  %v1650_v28 = vcombine.low %v6200_v27, %v6210_v29  ;;  %v6321_v42 = vrot.slane %v1340_v41, %v6061_v56  ;;  %v1370_v4 = vcombine.high %v1354_v47, %v1354_v47  ;;  %5565 = vmatprep.mubr.msk.f32.mxu0 %vm5733_vm3, %v5732_v37 }
  0xc9   : > { %v1371_v51 = vcombine.high %v1361_v48, %v1361_v48  ;;  %v6323_v59 = vcombine.low %v1361_v48, %v1369_v0  ;;  %v1290_v36 = vrot.slane %v1276_v5, %v6061_v56  ;;  %v1657_v6 = vrot.slane %v1649_v45, %v6061_v56 }
  0xca   : > { %v1291_v50 = vcombine.high %v1283_v43, %v1283_v43  ;;  %v1664_v17 = vrot.slane %v1650_v28, %v6061_v56  ;;  %v6333_v29 = vcombine.low %v6321_v42, %v1370_v4  ;;  %v6336_v35 = vrot.slane %v1283_v43, %v6061_v56 }
  0xcb   : > { %v6330_v27 = vcombine.low %v1371_v51, %v1354_v47  ;;  %v605_v30 = vsel %vm595_vm4, %v5896_v38, %v510_v40  ;;  %v1292_v3 = vcombine.high %v1290_v36, %v1290_v36  ;;  %v1306_v44 = vrot.slane %v1290_v36, %v6061_v56 }
  0xcc   : > { %v6342_v25 = vrot.slane %v1291_v50, %v6061_v56  ;;  %v1665_v15 = vcombine.low %v1657_v6, %v1664_v17  ;;  %v6345_v39 = vrot.slane %v5433_v61, %v6061_v56  ;;  %v2075_v45 = vrot.slane %v6323_v59, %v6061_v56  ;;  %v578_v50 = vpop.permute.xlu1 %577  ;;  %v568_v6 = vpop.permute.xlu0 %567 }
  0xcd   : > { %v2082_v41 = vrot.slane %v6330_v27, %v6061_v56  ;;  %v622_v47 = vsel %vm612_vm5, %v605_v30, %v566_v7  ;;  %v2089_v38 = vrot.slane %v6333_v29, %v6061_v56  ;;  %v1320_v40 = vrot.slane %v1292_v3, %v6061_v56 }
  0xce   : > { %v1322_v48 = vcombine.high %v1306_v44, %v1306_v44  ;;  %v2010_v0 = vcombine.low %v6336_v35, %v6342_v25  ;;  %5566 = vmatmul.mubr.msk.f32.gmra.mxu0 %vm2156_vm6, %v1665_v15  ;;  %v1082_v61 = vcombine.high %v622_v47, %v622_v47  ;;  %v1089_v5 = vrot.slane %v622_v47, %v6061_v56 }
  0xcf   : > { %5568 = vmatprep.mubr.msk.f32.mxu0 %vm5733_vm3, %v5732_v37  ;;  %v1698_v7 = vcombine.low %v6213_v26, %v6218_v1  ;;  %v1699_v43 = vcombine.low %v1690_v18, %v1697_v8  ;;  %v5437_v28 = vcombine.high %v6336_v35, %v6342_v25  ;;  %v2012_v4 = vcombine.low %v1306_v44, %v1320_v40 }
  0xd0   : > { %v6371_v51 = vcombine.low %v1322_v48, %v1347_v34  ;;  %v611_v36 = vsel %vm595_vm4, %v5922_v46, %v522_v31  ;;  %v6376_v26 = vrot.slane %v2010_v0, %v6061_v56  ;;  %v1096_v9 = vrot.slane %v1082_v61, %v6061_v56 }
  0xd1   : > { %v1097_v1 = vcombine.high %v1089_v5, %v1089_v5  ;;  %v1105_v60 = vrot.slane %v1089_v5, %v6061_v56  ;;  %v6381_v18 = vrot.slane %v2012_v4, %v6061_v56  ;;  %v1706_v34 = vrot.slane %v1698_v7, %v6061_v56 }
  0xd2   : > { %v2068_v8 = vrot.slane %v6371_v51, %v6061_v56  ;;  %v1713_v46 = vrot.slane %v1699_v43, %v6061_v56  ;;  %v1098_v17 = vcombine.high %v1096_v9, %v1096_v9  ;;  %v6388_v31 = vrot.slane %v1096_v9, %v6061_v56  ;;  %v3916_v43 = vpop.permute.xlu0 %3915 }
  0xd3   : > { %v1119_v30 = vrot.slane %v1097_v1, %v6061_v56  ;;  %v606_v3 = vsel %vm595_vm4, %v5980_v62, %v512_v14  ;;  %v1372_v15 = vcombine.high %v6321_v42, %v6321_v42  ;;  %v628_v47 = vsel %vm612_vm5, %v611_v36, %v578_v50  ;;  %v514_v14 = vpop.permute.xlu1 %513 }
  0xd4   : > { %v1714_v44 = vcombine.low %v1706_v34, %v1713_v46  ;;  %v1732_v40 = vrot.slane %v6232_v33, %v6061_v56  ;;  %v1126_v48 = vrot.slane %v1098_v17, %v6061_v56  ;;  %v1373_v5 = vcombine.high %v628_v47, %v628_v47 }
  0xd5   : > { %v1815_v0 = vcombine.low %v1105_v60, %v1119_v30  ;;  %v5434_v61 = vcombine.high %v1105_v60, %v1119_v30  ;;  %v1380_v7 = vrot.slane %v628_v47, %v6061_v56  ;;  %v1748_v33 = vcombine.low %v1739_v49, %v1746_v16 }
  0xd6   : > { %5569 = vmatmul.mubr.msk.f32.gmra.mxu0 %vm2156_vm6, %v1714_v44  ;;  %v1747_v62 = vcombine.low %v1725_v23, %v1732_v40  ;;  %v1128_v42 = vcombine.high %v6388_v31, %v6388_v31  ;;  %v1862_v20 = vcombine.low %v6388_v31, %v1126_v48  ;;  %v1387_v23 = vrot.slane %v1373_v5, %v6061_v56  ;;  %v3918_v5 = vpop.permute.xlu0 %3917 }
  0xd7   : > { %v6413_v4 = vrot.slane %v1815_v0, %v6061_v56  ;;  %v6416_v36 = vrot.slane %v5434_v61, %v6061_v56  ;;  %5571 = vmatprep.mubr.msk.f32.mxu0 %vm5733_vm3, %v5732_v37  ;;  %v1388_v58 = vcombine.high %v1380_v7, %v1380_v7  ;;  %v1396_v13 = vrot.slane %v1380_v7, %v6061_v56 }
  0xd8   : > { %v1755_v49 = vrot.slane %v1747_v62, %v6061_v56  ;;  %v1762_v16 = vrot.slane %v1748_v33, %v6061_v56  ;;  %v1389_v50 = vcombine.high %v1387_v23, %v1387_v23  ;;  %v1403_v9 = vrot.slane %v1387_v23, %v6061_v56 }
  0xd9   : > { %v1872_v1 = vrot.slane %v1862_v20, %v6061_v56  ;;  %v623_v60 = vsel %vm612_vm5, %v606_v3, %v568_v6  ;;  %v1410_v34 = vrot.slane %v1388_v58, %v6061_v56  ;;  %v1418_v46 = vcombine.high %v1396_v13, %v1396_v13  ;;  %v3930_v3 = vpop.permute.xlu1 %3929 }
  0xda   : > { %v2107_v17 = vcombine.low %v1372_v15, %v1396_v13  ;;  %v1763_v31 = vcombine.low %v1755_v49, %v1762_v16  ;;  %v1417_v30 = vrot.slane %v1389_v50, %v6061_v56  ;;  %v1419_v44 = vcombine.high %v1403_v9, %v1403_v9 }
  0xdb   : > { %v1130_v47 = vcombine.high %v623_v60, %v623_v60  ;;  %v1137_v40 = vrot.slane %v623_v60, %v6061_v56  ;;  %v1420_v48 = vcombine.high %v1410_v34, %v1410_v34  ;;  %v2108_v0 = vcombine.low %v1410_v34, %v1418_v46 }
  0xdc   : > { %v2117_v61 = vrot.slane %v2107_v17, %v6061_v56  ;;  %5572 = vmatmul.mubr.msk.f32.gmra.mxu0 %vm2156_vm6, %v1763_v31  ;;  %v6435_v6 = vsel %vm595_vm4, %v5983_v63, %v514_v14  ;;  %v6437_v15 = vcombine.low %v1417_v30, %v1419_v44  ;;  %v1781_v63 = vrot.slane %v6290_v19, %v6061_v56 }
  0xdd   : > { %v1144_v7 = vrot.slane %v1130_v47, %v6061_v56  ;;  %v1145_v62 = vcombine.high %v1137_v40, %v1137_v40  ;;  %v1153_v33 = vrot.slane %v1137_v40, %v6061_v56  ;;  %5574 = vmatprep.mubr.msk.f32.mxu0 %vm5733_vm3, %v5732_v37  ;;  %v6443_v20 = vcombine.low %v1420_v48, %v1403_v9  ;;  %v3920_v47 = vpop.permute.xlu1 %3919 }
  0xde   : > { %v2124_v23 = vrot.slane %v2108_v0, %v6061_v56  ;;  %v1797_v14 = vcombine.low %v6297_v55, %v6302_v12  ;;  %v2138_v58 = vrot.slane %v6437_v15, %v6061_v56  ;;  %v1796_v12 = vcombine.low %v1774_v24, %v1781_v63 }
  0xdf   : > { %v1146_v13 = vcombine.high %v1144_v7, %v1144_v7  ;;  %v1160_v49 = vrot.slane %v1144_v7, %v6061_v56  ;;  %v1167_v16 = vrot.slane %v1145_v62, %v6061_v56  ;;  %v2131_v50 = vrot.slane %v6443_v20, %v6061_v56 }
  0xe0   : > { %v6456_v9 = vcombine.low %v2117_v61, %v2124_v23  ;;  %v1175_v60 = vcombine.high %v1153_v33, %v1153_v33  ;;  %v1863_v34 = vcombine.low %v1128_v42, %v1153_v33  ;;  %v1811_v30 = vrot.slane %v1797_v14, %v6061_v56  ;;  %v570_v42 = vpop.permute.xlu0 %569 }
  0xe1   : > { %v6459_v19 = vrot.slane %v1146_v13, %v6061_v56  ;;  %v1176_v46 = vcombine.high %v1160_v49, %v1160_v49  ;;  %v1177_v55 = vcombine.high %v1167_v16, %v1167_v16  ;;  %v3941_v44 = vsel %vm595_vm4, %v6002_v10, %v3916_v43 }
  0xe2   : > { %v6464_v17 = vcombine.low %v1167_v16, %v1175_v60  ;;  %v1879_v31 = vrot.slane %v1863_v34, %v6061_v56  ;;  %v1804_v0 = vrot.slane %v1796_v12, %v6061_v56  ;;  %v3945_v57 = vsel %vm612_vm5, %v3941_v44, %v3930_v3 }
  0xe3   : > { %v6470_v40 = vcombine.low %v1177_v55, %v1160_v49  ;;  %v6473_v48 = vcombine.low %v6459_v19, %v1176_v46  ;;  %v3953_v7 = vcombine.high %v3945_v57, %v3945_v57  ;;  %v3960_v62 = vrot.slane %v3945_v57, %v6061_v56 }
  0xe4   : > { %v1886_v24 = vrot.slane %v6464_v17, %v6061_v56  ;;  %v6479_v61 = vcombine.low %v1872_v1, %v1879_v31  ;;  %v1812_v43 = vcombine.low %v1804_v0, %v1811_v30  ;;  %v2090_v33 = vcombine.low %v2068_v8, %v2075_v45  ;;  %v3934_v8 = vpop.permute.xlu1 %3933 }
  0xe5   : > { %v1893_v10 = vrot.slane %v6470_v40, %v6061_v56  ;;  %v2091_v1 = vcombine.low %v2082_v41, %v2089_v38  ;;  %v3967_v3 = vrot.slane %v3953_v7, %v6061_v56  ;;  %v3968_v23 = vcombine.high %v3960_v62, %v3960_v62 }
  0xe6   : > { %v3976_v63 = vrot.slane %v3960_v62, %v6061_v56  ;;  %v3942_v14 = vsel %vm595_vm4, %v6004_v11, %v3918_v5  ;;  %5575 = vmatmul.mubr.msk.f32.gmra.mxu0 %vm2156_vm6, %v1812_v43  ;;  %v2098_v59 = vrot.slane %v2090_v33, %v6061_v56  ;;  %v1845_v29 = vcombine.low %v6314_v2, %v6345_v39  ;;  %v3932_v5 = vpop.permute.xlu0 %3931 }
  0xe7   : > { %v2105_v45 = vrot.slane %v2091_v1, %v6061_v56  ;;  %v1846_v27 = vcombine.low %v6413_v4, %v6416_v36  ;;  %v3969_v41 = vcombine.high %v3967_v3, %v3967_v3  ;;  %v3983_v38 = vrot.slane %v3967_v3, %v6061_v56  ;;  %5577 = vmatprep.mubr.msk.f32.mxu0 %vm5733_vm3, %v5732_v37  ;;  %v5688_v3 = vld [vmem:[%s7187_s3 + $0x8] sm:$0xf] }
  0xe8   : > { %v3990_v51 = vrot.slane %v3968_v23, %v6061_v56  ;;  %v3943_v11 = vsel %vm595_vm4, %v6021_v21, %v3920_v47  ;;  %v1853_v49 = vrot.slane %v1845_v29, %v6061_v56  ;;  %v1178_v39 = vcombine.high %v6459_v19, %v6459_v19 }
  0xe9   : > { %v2106_v13 = vcombine.low %v2098_v59, %v2105_v45  ;;  %v1860_v2 = vrot.slane %v1846_v27, %v6061_v56  ;;  %v3997_v4 = vrot.slane %v3969_v41, %v6061_v56  ;;  %v1921_v60 = vrot.slane %v6473_v48, %v6061_v56  ;;  %v5689_v45 = vld [vmem:[%s7187_s3] sm:$0xff] }
  0xea   : > { %v4147_v36 = vcombine.low %v3976_v63, %v3990_v51  ;;  %v5468_v16 = vcombine.high %v3976_v63, %v3990_v51  ;;  %v624_v34 = vsel %vm612_vm5, %v6435_v6, %v570_v42  ;;  %v3947_v46 = vsel %vm612_vm5, %v3943_v11, %v3934_v8 }
  0xeb   : > { %5593 = vmatmul.mubr.msk.f32.vlgmr.msra.gmra.mxu1 %vm2156_vm6, %v2106_v13  ;;  %v1861_v21 = vcombine.low %v1853_v49, %v1860_v2  ;;  %v3946_v55 = vsel %vm612_vm5, %v3942_v14, %v3932_v5  ;;  %v4149_v12 = vcombine.low %v3983_v38, %v3997_v4  ;;  %v5469_v31 = vcombine.high %v3983_v38, %v3997_v4 }
  0xec   : > { %v6526_v19 = vrot.slane %v4147_v36, %v6061_v56  ;;  %v6529_v30 = vrot.slane %v5468_v16, %v6061_v56  ;;  %5595 = vmatprep.mubr.msk.f32.mxu1 %vm5733_vm3, %v5732_v37  ;;  %v1179_v44 = vcombine.high %v624_v34, %v624_v34  ;;  %v1186_v6 = vrot.slane %v624_v34, %v6061_v56 }
  0xed   : > { %5578 = vmatmul.mubr.msk.f32.gmra.mxu0 %vm2156_vm6, %v1861_v21  ;;  %v4050_v47 = vcombine.high %v3947_v46, %v3947_v46  ;;  %v4057_v42 = vrot.slane %v3947_v46, %v6061_v56  ;;  %v6537_v48 = vrot.slane %v4149_v12, %v6061_v56  ;;  %v6540_v0 = vrot.slane %v5469_v31, %v6061_v56  ;;  %v3922_v31 = vpop.permute.xlu1 %3921 }
  0xee   : > { %v4179_v57 = vcombine.low %v6526_v19, %v6529_v30  ;;  %v4002_v7 = vcombine.high %v3946_v55, %v3946_v55  ;;  %5580 = vmatprep.mubr.msk.f32.mxu0 %vm5733_vm3, %v5732_v37  ;;  %v1193_v62 = vrot.slane %v1179_v44, %v6061_v56  ;;  %v1194_v43 = vcombine.high %v1186_v6, %v1186_v6 }
  0xef   : > { %v1202_v33 = vrot.slane %v1186_v6, %v6061_v56  ;;  %v4064_v1 = vrot.slane %v4050_v47, %v6061_v56  ;;  %5599 = vmatpush3.msk.msra.mxu1 %vm2187_vm2, %v5688_v3  ;;  %v4065_v23 = vcombine.high %v4057_v42, %v4057_v42  ;;  %v4073_v63 = vrot.slane %v4057_v42, %v6061_v56 }
  0xf0   : > { %v4009_v14 = vrot.slane %v3946_v55, %v6061_v56  ;;  %v4016_v59 = vrot.slane %v4002_v7, %v6061_v56  ;;  %5600 = vmatprep.subr.mxu1 %v5689_v45  ;;  %v1195_v29 = vcombine.high %v1193_v62, %v1193_v62  ;;  %v1209_v27 = vrot.slane %v1193_v62, %v6061_v56  ;;  %v516_v7 = vpop.permute.xlu0 %515 }
  0xf1   : > { %v1216_v41 = vrot.slane %v1194_v43, %v6061_v56  ;;  %v1224_v38 = vcombine.high %v1202_v33, %v1202_v33  ;;  %5601 = vmatpush3.msra.mxu1 %v5689_v45  ;;  %v1912_v51 = vcombine.low %v1178_v39, %v1202_v33  ;;  %v4066_v11 = vcombine.high %v4064_v1, %v4064_v1 }
  0xf2   : > { %v4080_v8 = vrot.slane %v4064_v1, %v6061_v56  ;;  %v4087_v5 = vrot.slane %v4065_v23, %v6061_v56  ;;  %v1223_v13 = vrot.slane %v1195_v29, %v6061_v56  ;;  %v1225_v49 = vcombine.high %v1209_v27, %v1209_v27 }
  0xf3   : > { %v1226_v2 = vcombine.high %v1216_v41, %v1216_v41  ;;  %v6564_v4 = vcombine.low %v1216_v41, %v1224_v38  ;;  %v1928_v36 = vrot.slane %v1912_v51, %v6061_v56  ;;  %v6568_v16 = vrot.slane %v4066_v11, %v6061_v56 }
  0xf4   : > { %v4095_v21 = vcombine.high %v4073_v63, %v4073_v63  ;;  %v4096_v34 = vcombine.high %v4080_v8, %v4080_v8  ;;  %v6574_v55 = vcombine.low %v1223_v13, %v1225_v49  ;;  %v4097_v12 = vcombine.high %v4087_v5, %v4087_v5  ;;  %v572_v13 = vpop.permute.xlu0 %571 }
  0xf5   : > { %v6570_v46 = vcombine.low %v1226_v2, %v1209_v27  ;;  %v1935_v39 = vrot.slane %v6564_v4, %v6061_v56  ;;  %v6576_v44 = vcombine.low %v1921_v60, %v1928_v36  ;;  %v4017_v42 = vcombine.high %v4009_v14, %v4009_v14 }
  0xf6   : > { %v6578_v6 = vcombine.low %v4087_v5, %v4095_v21  ;;  %v6581_v47 = vcombine.low %v6568_v16, %v4096_v34  ;;  %v6585_v43 = vcombine.low %v4097_v12, %v4080_v8  ;;  %v4018_v33 = vcombine.high %v4016_v59, %v4016_v59 }
  0xf7   : > { %v1942_v62 = vrot.slane %v6570_v46, %v6061_v56  ;;  %v4025_v1 = vrot.slane %v4009_v14, %v6061_v56  ;;  %v4032_v60 = vrot.slane %v4016_v59, %v6061_v56  ;;  %v4039_v23 = vrot.slane %v4017_v42, %v6061_v56 }
  0xf8   : > { %v4255_v3 = vrot.slane %v6578_v6, %v6061_v56  ;;  %v3944_v45 = vsel %vm595_vm4, %v6023_v22, %v3922_v31  ;;  %v4262_v29 = vrot.slane %v6585_v43, %v6061_v56  ;;  %v4046_v27 = vrot.slane %v4018_v33, %v6061_v56 }
  0xf9   : > { %v1895_v14 = vcombine.low %v1886_v24, %v1893_v10  ;;  %v1902_v59 = vrot.slane %v6479_v61, %v6061_v56  ;;  %v4048_v41 = vcombine.high %v4032_v60, %v4032_v60  ;;  %v4196_v38 = vcombine.low %v4025_v1, %v4039_v23  ;;  %v3936_v61 = vpop.permute.xlu1 %3935 }
  0xfa   : > { %v5470_v51 = vcombine.high %v4025_v1, %v4039_v23  ;;  %v2140_v22 = vcombine.low %v2131_v50, %v2138_v58  ;;  %v4198_v11 = vcombine.low %v4032_v60, %v4046_v27  ;;  %v2147_v17 = vrot.slane %v6456_v9, %v6061_v56 }
  0xfb   : > { %v1909_v40 = vrot.slane %v1895_v14, %v6061_v56  ;;  %v608_v24 = vsel %vm595_vm4, %v6038_v32, %v516_v7  ;;  %v4199_v10 = vcombine.low %v4048_v41, %v4073_v63  ;;  %v4206_v8 = vrot.slane %v4196_v38, %v6061_v56 }
  0xfc   : > { %v4213_v5 = vrot.slane %v5470_v51, %v6061_v56  ;;  %v2154_v15 = vrot.slane %v2140_v22, %v6061_v56  ;;  %v4220_v20 = vrot.slane %v4198_v11, %v6061_v56  ;;  %v4098_v50 = vcombine.high %v6568_v16, %v6568_v16 }
  0xfd   : > { %v1910_v58 = vcombine.low %v1902_v59, %v1909_v40  ;;  %v4269_v9 = vrot.slane %v6581_v47, %v6061_v56  ;;  %v4227_v32 = vrot.slane %v4199_v10, %v6061_v56  ;;  %v3948_v2 = vsel %vm612_vm5, %v3944_v45, %v3936_v61 }
  0xfe   : > { %v4228_v49 = vcombine.low %v4206_v8, %v4213_v5  ;;  %v2155_v63 = vcombine.low %v2147_v17, %v2154_v15  ;;  %v4099_v36 = vcombine.high %v3948_v2, %v3948_v2  ;;  %v4106_v21 = vrot.slane %v3948_v2, %v6061_v56 }
  0xff   : > { %5581 = vmatmul.mubr.msk.f32.gmra.mxu0 %vm2156_vm6, %v1910_v58  ;;  %v1970_v34 = vrot.slane %v6574_v55, %v6061_v56  ;;  %v625_v12 = vsel %vm612_vm5, %v608_v24, %v572_v13  ;;  %v4229_v16 = vcombine.low %v4220_v20, %v4227_v32  ;;  %v4180_v60 = vcombine.low %v6537_v48, %v6540_v0 }
 0x100   : > { %v4236_v31 = vrot.slane %v4228_v49, %v6061_v56  ;;  %5596 = vmatmul.mubr.msk.f32.gmra.mxu1 %vm2156_vm6, %v2155_v63  ;;  %v1227_v47 = vcombine.high %v625_v12, %v625_v12  ;;  %v1234_v42 = vrot.slane %v625_v12, %v6061_v56  ;;  %v4113_v7 = vrot.slane %v4099_v36, %v6061_v56 }
 0x101   : > { %v4114_v33 = vcombine.high %v4106_v21, %v4106_v21  ;;  %v4122_v1 = vrot.slane %v4106_v21, %v6061_v56  ;;  %5583 = vmatprep.mubr.msk.f32.mxu0 %vm5733_vm3, %v5732_v37  ;;  %v4243_v55 = vrot.slane %v4229_v16, %v6061_v56  ;;  %v4187_v5 = vrot.slane %v4179_v57, %v6061_v56 }
 0x102   : > { %v1241_v23 = vrot.slane %v1227_v47, %v6061_v56  ;;  %v1242_v45 = vcombine.high %v1234_v42, %v1234_v42  ;;  %v1250_v27 = vrot.slane %v1234_v42, %v6061_v56  ;;  %v4115_v14 = vcombine.high %v4113_v7, %v4113_v7 }
 0x103   : > { %v4129_v59 = vrot.slane %v4113_v7, %v6061_v56  ;;  %v4136_v41 = vrot.slane %v4114_v33, %v6061_v56  ;;  %v4144_v38 = vcombine.high %v4122_v1, %v4122_v1  ;;  %v4244_v51 = vcombine.low %v4236_v31, %v4243_v55 }
 0x104   : > { %v4248_v22 = vcombine.low %v4098_v50, %v4122_v1  ;;  %v1243_v11 = vcombine.high %v1241_v23, %v1241_v23  ;;  %v1257_v48 = vrot.slane %v1241_v23, %v6061_v56  ;;  %v4143_v0 = vrot.slane %v4115_v14, %v6061_v56 }
 0x105   : > { %v4145_v40 = vcombine.high %v4129_v59, %v4129_v59  ;;  %v4146_v17 = vcombine.high %v4136_v41, %v4136_v41  ;;  %v4294_v24 = vcombine.low %v4136_v41, %v4144_v38  ;;  %v1264_v10 = vrot.slane %v1242_v45, %v6061_v56 }
 0x106   : > { %v4276_v61 = vrot.slane %v4248_v22, %v6061_v56  ;;  %v1271_v8 = vrot.slane %v1243_v11, %v6061_v56  ;;  %v4194_v58 = vrot.slane %v4180_v60, %v6061_v56  ;;  %v1944_v19 = vcombine.low %v1935_v39, %v1942_v62 }
 0x107   : > { %v4295_v15 = vcombine.low %v4146_v17, %v4129_v59  ;;  %v4296_v13 = vcombine.low %v4143_v0, %v4145_v40  ;;  %v4303_v20 = vrot.slane %v4294_v24, %v6061_v56  ;;  %v1961_v32 = vcombine.low %v1250_v27, %v1264_v10 }
 0x108   : > { %v4278_v50 = vcombine.low %v4269_v9, %v4276_v61  ;;  %v5435_v49 = vcombine.high %v1250_v27, %v1264_v10  ;;  %v1963_v63 = vcombine.low %v1257_v48, %v1271_v8  ;;  %v5436_v36 = vcombine.high %v1257_v48, %v1271_v8 }
 0x109   : > { %v4310_v2 = vrot.slane %v4295_v15, %v6061_v56  ;;  %v4195_v21 = vcombine.low %v4187_v5, %v4194_v58  ;;  %v1977_v30 = vrot.slane %v1961_v32, %v6061_v56  ;;  %v1951_v12 = vrot.slane %v6576_v44, %v6061_v56 }
 0x10a   : > { %v1984_v57 = vrot.slane %v5435_v49, %v6061_v56  ;;  %v1991_v9 = vrot.slane %v1963_v63, %v6061_v56  ;;  %v2019_v16 = vrot.slane %v5436_v36, %v6061_v56  ;;  %v1958_v31 = vrot.slane %v1944_v19, %v6061_v56 }
 0x10b   : > { %5602 = vmatprep.mubr.msk.f32.mxu1 %vm2156_vm6, %v4195_v21  ;;  %v4277_v4 = vcombine.low %v4255_v3, %v4262_v29  ;;  %v4292_v46 = vrot.slane %v4278_v50, %v6061_v56  ;;  %v1992_v39 = vcombine.low %v1970_v34, %v1977_v30  ;;  %v4317_v44 = vrot.slane %v4296_v13, %v6061_v56 }
 0x10c   : > { %v1993_v62 = vcombine.low %v1984_v57, %v1991_v9  ;;  %5603 = vmatmul.mubr.msk.f32.vlgmr.msra.gmra.mxu1 %vm2156_vm6, %v4244_v51  ;;  %v4318_v47 = vcombine.low %v4303_v20, %v4310_v2  ;;  %v2033_v42 = vrot.slane %v5437_v28, %v6061_v56  ;;  %v1959_v7 = vcombine.low %v1951_v12, %v1958_v31 }
 0x10d   : > { %v4285_v43 = vrot.slane %v4277_v4, %v6061_v56  ;;  %v2041_v6 = vcombine.low %v2019_v16, %v6376_v26  ;;  %v2000_v3 = vrot.slane %v1992_v39, %v6061_v56  ;;  %v4332_v33 = vrot.slane %v4317_v44, %v6061_v56 }
 0x10e   : > { %v2007_v29 = vrot.slane %v1993_v62, %v6061_v56  ;;  %v4325_v34 = vrot.slane %v4318_v47, %v6061_v56  ;;  %v2042_v1 = vcombine.low %v2033_v42, %v6381_v18  ;;  %5584 = vmatmul.mubr.msk.f32.gmra.mxu0 %vm2156_vm6, %v1959_v7 }
 0x10f   : > { %v4293_v60 = vcombine.low %v4285_v43, %v4292_v46  ;;  %5586 = vmatprep.mubr.msk.f32.mxu0 %vm5733_vm3, %v5732_v37  ;;  %v2049_v28 = vrot.slane %v2041_v6, %v6061_v56 }
 0x110   : > { %v2008_v35 = vcombine.low %v2000_v3, %v2007_v29  ;;  %v4333_v25 = vcombine.low %v4325_v34, %v4332_v33  ;;  %v2056_v26 = vrot.slane %v2042_v1, %v6061_v56 }
 0x111   : > { %5605 = vmatprep.mubr.msk.f32.mxu1 %vm2156_vm6, %v4293_v60 }
 0x112   : > { %5606 = vmatmul.mubr.msk.f32.gmra.mxu1 %vm2156_vm6, %v4333_v25  ;;  %5587 = vmatmul.mubr.msk.f32.gmra.mxu0 %vm2156_vm6, %v2008_v35  ;;  %v2057_v18 = vcombine.low %v2049_v28, %v2056_v26 }
 0x113   : > { %5589 = vmatprep.mubr.msk.f32.mxu0 %vm5733_vm3, %v5732_v37 }
 0x116   : > { %5590 = vmatmul.mubr.msk.f32.gmra.mxu0 %vm2156_vm6, %v2057_v18 }
 0x172   : > { %v2257_v55 = vpop.f32.mrf.mxu0 }
 0x173   : > { %v2346_v23 = vcombine.high %v2257_v55, %v2257_v55  ;;  %v2353_v45 = vrot.slane %v2257_v55, %v6061_v56 }
 0x174   : > { %v5555_v27 = vpop.f32.mrf.mxu0 }
 0x175   : > { %v2360_v14 = vrot.slane %v2346_v23, %v6061_v56  ;;  %v2361_v59 = vcombine.high %v2353_v45, %v2353_v45  ;;  %v2369_v38 = vrot.slane %v2353_v45, %v6061_v56 }
 0x177   : > { %v2362_v41 = vcombine.high %v2360_v14, %v2360_v14  ;;  %v2383_v51 = vrot.slane %v2361_v59, %v6061_v56  ;;  %v2376_v22 = vrot.slane %v2360_v14, %v6061_v56 }
 0x179   : > { %v2390_v37 = vrot.slane %v2362_v41, %v6061_v56  ;;  %v3081_v11 = vcombine.low %v2369_v38, %v2383_v51  ;;  %v5454_v48 = vcombine.high %v2369_v38, %v2383_v51 }
 0x17b   : > { %v3083_v0 = vcombine.low %v2376_v22, %v2390_v37  ;;  %v5455_v40 = vcombine.high %v2376_v22, %v2390_v37  ;;  %v3091_v17 = vrot.slane %v3081_v11, %v6061_v56  ;;  %v3098_v24 = vrot.slane %v5454_v48, %v6061_v56  ;;  %v2262_v61 = vpop.f32.mrf.mxu0 }
 0x17c   : > { %v2395_v10 = vcombine.high %v2262_v61, %v2262_v61  ;;  %v2402_v8 = vrot.slane %v2262_v61, %v6061_v56 }
 0x17d   : > { %v3105_v5 = vrot.slane %v3083_v0, %v6061_v56  ;;  %v3112_v15 = vrot.slane %v5455_v40, %v6061_v56  ;;  %v3113_v13 = vcombine.low %v3091_v17, %v3098_v24  ;;  %v5558_v20 = vpop.f32.mrf.mxu0 }
 0x17e   : > { %v2409_v58 = vrot.slane %v2395_v10, %v6061_v56  ;;  %v2410_v50 = vcombine.high %v2402_v8, %v2402_v8  ;;  %v2418_v63 = vrot.slane %v2402_v8, %v6061_v56 }
 0x17f   : > { %v3114_v32 = vcombine.low %v3105_v5, %v3112_v15  ;;  %v3121_v21 = vrot.slane %v3113_v13, %v6061_v56 }
 0x180   : > { %v2411_v49 = vcombine.high %v2409_v58, %v2409_v58  ;;  %v2425_v2 = vrot.slane %v2409_v58, %v6061_v56  ;;  %v2432_v36 = vrot.slane %v2410_v50, %v6061_v56 }
 0x181   : > { %v3128_v19 = vrot.slane %v3114_v32, %v6061_v56 }
 0x182   : > { %v2439_v30 = vrot.slane %v2411_v49, %v6061_v56  ;;  %v2441_v57 = vcombine.high %v2425_v2, %v2425_v2  ;;  %v3130_v9 = vcombine.low %v2418_v63, %v2432_v36  ;;  %v5456_v12 = vcombine.high %v2418_v63, %v2432_v36 }
 0x183   : > { %v3129_v16 = vcombine.low %v3121_v21, %v3128_v19  ;;  %v2267_v39 = vpop.f32.mrf.mxu0 }
 0x184   : > { %v3132_v31 = vcombine.low %v2425_v2, %v2439_v30  ;;  %v3139_v4 = vrot.slane %v3130_v9, %v6061_v56  ;;  %v3146_v46 = vrot.slane %v5456_v12, %v6061_v56  ;;  %v2444_v62 = vcombine.high %v2267_v39, %v2267_v39 }
 0x185   : > { %3874 = vst.msk [vmem:[#allocation2 + $0x11] sm:$0xff] %vm612_vm5, %v3129_v16  ;;  %v2451_v44 = vrot.slane %v2267_v39, %v6061_v56  ;;  %v3160_v42 = vrot.slane %v2441_v57, %v6061_v56  ;;  %v2443_v43 = vcombine.high %v2439_v30, %v2439_v30  ;;  %v5561_v6 = vpop.f32.mrf.mxu0 }
 0x186   : > { %v3153_v47 = vrot.slane %v3132_v31, %v6061_v56  ;;  %v3161_v7 = vcombine.low %v3139_v4, %v3146_v46  ;;  %v2458_v3 = vrot.slane %v2444_v62, %v6061_v56 }
 0x187   : > { %v2459_v29 = vcombine.high %v2451_v44, %v2451_v44  ;;  %v2467_v34 = vrot.slane %v2451_v44, %v6061_v56  ;;  %v2272_v60 = vpop.f32.mrf.mxu0 }
 0x188   : > { %v3162_v33 = vcombine.low %v3153_v47, %v3160_v42  ;;  %v3169_v1 = vrot.slane %v3161_v7, %v6061_v56  ;;  %v2460_v35 = vcombine.high %v2458_v3, %v2458_v3  ;;  %v2474_v25 = vrot.slane %v2458_v3, %v6061_v56 }
 0x189   : > { %v2481_v28 = vrot.slane %v2459_v29, %v6061_v56  ;;  %v2489_v26 = vcombine.high %v2467_v34, %v2467_v34  ;;  %v3178_v55 = vcombine.low %v2443_v43, %v2467_v34  ;;  %v2493_v23 = vcombine.high %v2272_v60, %v2272_v60  ;;  %v5564_v27 = vpop.f32.mrf.mxu0 }
 0x18a   : > { %v3176_v18 = vrot.slane %v3162_v33, %v6061_v56  ;;  %v2500_v45 = vrot.slane %v2272_v60, %v6061_v56  ;;  %v2488_v14 = vrot.slane %v2460_v35, %v6061_v56  ;;  %v2490_v59 = vcombine.high %v2474_v25, %v2474_v25 }
 0x18b   : > { %v2491_v41 = vcombine.high %v2481_v28, %v2481_v28  ;;  %v3179_v38 = vcombine.low %v2481_v28, %v2489_v26  ;;  %v3188_v22 = vrot.slane %v3178_v55, %v6061_v56  ;;  %v2507_v37 = vrot.slane %v2493_v23, %v6061_v56 }
 0x18c   : > { %v3177_v51 = vcombine.low %v3169_v1, %v3176_v18  ;;  %v2508_v11 = vcombine.high %v2500_v45, %v2500_v45  ;;  %v3181_v0 = vcombine.low %v2488_v14, %v2490_v59  ;;  %v2492_v17 = vcombine.high %v2488_v14, %v2488_v14 }
 0x18d   : > { %v3180_v48 = vcombine.low %v2491_v41, %v2474_v25  ;;  %v3195_v40 = vrot.slane %v3179_v38, %v6061_v56  ;;  %v2509_v24 = vcombine.high %v2507_v37, %v2507_v37  ;;  %v2516_v61 = vrot.slane %v2500_v45, %v6061_v56 }
 0x18e   : > { %3876 = vst.msk [vmem:[#allocation2 + $0x19] sm:$0x7f] %vm3875_vm7, %v3177_v51  ;;  %v2523_v10 = vrot.slane %v2507_v37, %v6061_v56  ;;  %v2530_v8 = vrot.slane %v2508_v11, %v6061_v56  ;;  %v2277_v5 = vpop.f32.mrf.mxu0  ;;  %v3209_v13 = vrot.slane %v3181_v0, %v6061_v56 }
 0x18f   : > { %v3202_v15 = vrot.slane %v3180_v48, %v6061_v56  ;;  %v3210_v20 = vcombine.low %v3188_v22, %v3195_v40  ;;  %v2542_v58 = vcombine.high %v2277_v5, %v2277_v5  ;;  %v2537_v50 = vrot.slane %v2509_v24, %v6061_v56 }
 0x190   : > { %v2538_v32 = vcombine.high %v2516_v61, %v2516_v61  ;;  %v2540_v49 = vcombine.high %v2530_v8, %v2530_v8  ;;  %v3227_v63 = vcombine.low %v2492_v17, %v2516_v61  ;;  %v5567_v2 = vpop.f32.mrf.mxu0  ;;  %v2549_v21 = vrot.slane %v2277_v5, %v6061_v56 }
 0x191   : > { %v3211_v36 = vcombine.low %v3202_v15, %v3209_v13  ;;  %v2556_v19 = vrot.slane %v2542_v58, %v6061_v56  ;;  %v3218_v30 = vrot.slane %v3210_v20, %v6061_v56  ;;  %v3257_v31 = vrot.slane %v2537_v50, %v6061_v56 }
 0x192   : > { %v3228_v57 = vcombine.low %v2530_v8, %v2538_v32  ;;  %v3229_v9 = vcombine.low %v2540_v49, %v2523_v10  ;;  %v3236_v12 = vrot.slane %v3227_v63, %v6061_v56  ;;  %v2557_v4 = vcombine.high %v2549_v21, %v2549_v21 }
 0x193   : > { %v3225_v16 = vrot.slane %v3211_v36, %v6061_v56  ;;  %v2558_v46 = vcombine.high %v2556_v19, %v2556_v19  ;;  %v5457_v44 = vcombine.high %v2523_v10, %v2537_v50  ;;  %v2565_v47 = vrot.slane %v2549_v21, %v6061_v56 }
 0x194   : > { %v3243_v39 = vrot.slane %v3228_v57, %v6061_v56  ;;  %v3250_v62 = vrot.slane %v3229_v9, %v6061_v56  ;;  %v2572_v7 = vrot.slane %v2556_v19, %v6061_v56  ;;  %v2579_v43 = vrot.slane %v2557_v4, %v6061_v56 }
 0x195   : > { %v3226_v42 = vcombine.low %v3218_v30, %v3225_v16  ;;  %v2586_v6 = vrot.slane %v2558_v46, %v6061_v56  ;;  %v3285_v55 = vrot.slane %v5457_v44, %v6061_v56 }
 0x196   : > { %v3258_v3 = vcombine.low %v3236_v12, %v3243_v39  ;;  %v3259_v29 = vcombine.low %v3250_v62, %v3257_v31  ;;  %v2282_v34 = vpop.f32.mrf.mxu0  ;;  %v3276_v33 = vcombine.low %v2565_v47, %v2579_v43  ;;  %v5458_v1 = vcombine.high %v2565_v47, %v2579_v43 }
 0x197   : > { %3877 = vst.msk [vmem:[#allocation2 + $0x21] sm:$0xff] %vm612_vm5, %v3226_v42  ;;  %v3278_v60 = vcombine.low %v2572_v7, %v2586_v6  ;;  %v2591_v28 = vcombine.high %v2282_v34, %v2282_v34  ;;  %v2598_v26 = vrot.slane %v2282_v34, %v6061_v56  ;;  %v5459_v22 = vcombine.high %v2572_v7, %v2586_v6 }
 0x198   : > { %v3266_v35 = vrot.slane %v3258_v3, %v6061_v56  ;;  %v3273_v25 = vrot.slane %v3259_v29, %v6061_v56  ;;  %v5570_v18 = vpop.f32.mrf.mxu0  ;;  %v3292_v23 = vrot.slane %v3276_v33, %v6061_v56  ;;  %v3299_v45 = vrot.slane %v5458_v1, %v6061_v56 }
 0x199   : > { %v3306_v27 = vrot.slane %v3278_v60, %v6061_v56  ;;  %v2605_v59 = vrot.slane %v2591_v28, %v6061_v56  ;;  %v2606_v41 = vcombine.high %v2598_v26, %v2598_v26  ;;  %v2614_v11 = vrot.slane %v2598_v26, %v6061_v56 }
 0x19a   : > { %v3274_v14 = vcombine.low %v3266_v35, %v3273_v25  ;;  %v3307_v38 = vcombine.low %v3285_v55, %v3292_v23  ;;  %v3333_v50 = vrot.slane %v5459_v22, %v6061_v56 }
 0x19b   : > { %v3308_v51 = vcombine.low %v3299_v45, %v3306_v27  ;;  %v2607_v37 = vcombine.high %v2605_v59, %v2605_v59  ;;  %v2621_v48 = vrot.slane %v2605_v59, %v6061_v56  ;;  %v2628_v0 = vrot.slane %v2606_v41, %v6061_v56 }
 0x19c   : > { %3878 = vst.msk [vmem:[#allocation2 + $0x29] sm:$0x7f] %vm3875_vm7, %v3274_v14  ;;  %v2287_v40 = vpop.f32.mrf.mxu0  ;;  %v3315_v17 = vrot.slane %v3307_v38, %v6061_v56 }
 0x19d   : > { %v3322_v24 = vrot.slane %v3308_v51, %v6061_v56  ;;  %v2640_v61 = vcombine.high %v2287_v40, %v2287_v40  ;;  %v2647_v10 = vrot.slane %v2287_v40, %v6061_v56  ;;  %v2635_v8 = vrot.slane %v2607_v37, %v6061_v56 }
 0x19e   : > { %v2637_v5 = vcombine.high %v2621_v48, %v2621_v48  ;;  %v3325_v15 = vcombine.low %v2614_v11, %v2628_v0  ;;  %v5460_v13 = vcombine.high %v2614_v11, %v2628_v0  ;;  %v5573_v20 = vpop.f32.mrf.mxu0  ;;  %v3354_v36 = vrot.slane %v2621_v48, %v6061_v56 }
 0x19f   : > { %v3323_v58 = vcombine.low %v3315_v17, %v3322_v24  ;;  %v2654_v32 = vrot.slane %v2640_v61, %v6061_v56  ;;  %v2655_v49 = vcombine.high %v2647_v10, %v2647_v10  ;;  %v2639_v21 = vcombine.high %v2635_v8, %v2635_v8 }
 0x1a0   : > { %v3340_v63 = vrot.slane %v3325_v15, %v6061_v56  ;;  %v3347_v2 = vrot.slane %v5460_v13, %v6061_v56  ;;  %v2663_v30 = vrot.slane %v2647_v10, %v6061_v56  ;;  %v3372_v16 = vcombine.low %v2635_v8, %v2637_v5 }
 0x1a1   : > { %3879 = vst.msk [vmem:[#allocation2 + $0x31] sm:$0xff] %vm612_vm5, %v3323_v58  ;;  %v2656_v19 = vcombine.high %v2654_v32, %v2654_v32  ;;  %v2677_v57 = vrot.slane %v2655_v49, %v6061_v56  ;;  %v2670_v31 = vrot.slane %v2654_v32, %v6061_v56 }
 0x1a2   : > { %v3355_v9 = vcombine.low %v3333_v50, %v3340_v63  ;;  %v3356_v12 = vcombine.low %v3347_v2, %v3354_v36  ;;  %v2685_v4 = vcombine.high %v2663_v30, %v2663_v30  ;;  %v3373_v44 = vcombine.low %v2639_v21, %v2663_v30 }
 0x1a3   : > { %v2687_v46 = vcombine.high %v2677_v57, %v2677_v57  ;;  %v2684_v47 = vrot.slane %v2656_v19, %v6061_v56  ;;  %v3382_v6 = vrot.slane %v3372_v16, %v6061_v56  ;;  %v2686_v29 = vcombine.high %v2670_v31, %v2670_v31 }
 0x1a4   : > { %v3363_v39 = vrot.slane %v3355_v9, %v6061_v56  ;;  %v3370_v62 = vrot.slane %v3356_v12, %v6061_v56  ;;  %v3374_v42 = vcombine.low %v2677_v57, %v2685_v4  ;;  %v3389_v3 = vrot.slane %v3373_v44, %v6061_v56 }
 0x1a5   : > { %v3375_v7 = vcombine.low %v2687_v46, %v2670_v31  ;;  %v2688_v26 = vcombine.high %v2684_v47, %v2684_v47  ;;  %v3421_v59 = vcombine.low %v2684_v47, %v2686_v29 }
 0x1a6   : > { %v3371_v43 = vcombine.low %v3363_v39, %v3370_v62  ;;  %v3396_v34 = vrot.slane %v3374_v42, %v6061_v56  ;;  %v2292_v1 = vpop.f32.mrf.mxu0  ;;  %v3404_v60 = vcombine.low %v3382_v6, %v3389_v3 }
 0x1a7   : > { %v3403_v33 = vrot.slane %v3375_v7, %v6061_v56  ;;  %v2689_v35 = vcombine.high %v2292_v1, %v2292_v1  ;;  %v2696_v25 = vrot.slane %v2292_v1, %v6061_v56  ;;  %v3430_v8 = vrot.slane %v3421_v59, %v6061_v56 }
 0x1a8   : > { %3880 = vst.msk [vmem:[#allocation2 + $0x39] sm:$0x7f] %vm3875_vm7, %v3371_v43  ;;  %v5576_v18 = vpop.f32.mrf.mxu0  ;;  %v3412_v27 = vrot.slane %v3404_v60, %v6061_v56 }
 0x1a9   : > { %v3405_v28 = vcombine.low %v3396_v34, %v3403_v33  ;;  %v2703_v55 = vrot.slane %v2689_v35, %v6061_v56  ;;  %v2704_v23 = vcombine.high %v2696_v25, %v2696_v25  ;;  %v2712_v45 = vrot.slane %v2696_v25, %v6061_v56 }
 0x1ab   : > { %v3419_v14 = vrot.slane %v3405_v28, %v6061_v56  ;;  %v2322_v41 = vpop.f32.mrf.mxu1  ;;  %v2705_v38 = vcombine.high %v2703_v55, %v2703_v55  ;;  %v2726_v51 = vrot.slane %v2704_v23, %v6061_v56  ;;  %v2734_v22 = vcombine.high %v2712_v45, %v2712_v45 }
 0x1ac   : > { %v3422_v11 = vcombine.low %v2688_v26, %v2712_v45  ;;  %v2983_v48 = vcombine.high %v2322_v41, %v2322_v41  ;;  %v2990_v0 = vrot.slane %v2322_v41, %v6061_v56  ;;  %v2719_v20 = vrot.slane %v2703_v55, %v6061_v56 }
 0x1ad   : > { %v3420_v37 = vcombine.low %v3412_v27, %v3419_v14  ;;  %v5594_v40 = vpop.f32.mrf.mxu1  ;;  %v2297_v17 = vpop.f32.mrf.mxu0  ;;  %v2733_v24 = vrot.slane %v2705_v38, %v6061_v56  ;;  %v2736_v61 = vcombine.high %v2726_v51, %v2726_v51  ;;  %v3423_v10 = vcombine.low %v2726_v51, %v2734_v22 }
 0x1ae   : > { %v3437_v5 = vrot.slane %v3422_v11, %v6061_v56  ;;  %v2998_v15 = vcombine.high %v2990_v0, %v2990_v0  ;;  %v2997_v32 = vrot.slane %v2983_v48, %v6061_v56  ;;  %v2738_v2 = vcombine.high %v2297_v17, %v2297_v17 }
 0x1af   : > { %3881 = vst.msk [vmem:[#allocation2 + $0x41] sm:$0xff] %vm612_vm5, %v3420_v37  ;;  %v5579_v13 = vpop.f32.mrf.mxu0  ;;  %v3444_v58 = vrot.slane %v3423_v10, %v6061_v56  ;;  %v3451_v50 = vrot.slane %v2736_v61, %v6061_v56  ;;  %v3469_v21 = vcombine.low %v2719_v20, %v2733_v24  ;;  %v5461_v19 = vcombine.high %v2719_v20, %v2733_v24 }
 0x1b0   : > { %v3452_v49 = vcombine.low %v3430_v8, %v3437_v5  ;;  %v3020_v63 = vrot.slane %v2998_v15, %v6061_v56  ;;  %v6808_v57 = vrot.slane %v2990_v0, %v6061_v56  ;;  %v2999_v12 = vcombine.high %v2997_v32, %v2997_v32 }
 0x1b1   : > { %v3453_v36 = vcombine.low %v3444_v58, %v3451_v50  ;;  %v3013_v16 = vrot.slane %v2997_v32, %v6061_v56  ;;  %v2745_v4 = vrot.slane %v2297_v17, %v6061_v56  ;;  %v2752_v46 = vrot.slane %v2738_v2, %v6061_v56 }
 0x1b2   : > { %v3460_v30 = vrot.slane %v3452_v49, %v6061_v56  ;;  %v3030_v31 = vcombine.high %v3020_v63, %v3020_v63  ;;  %v3479_v62 = vrot.slane %v3469_v21, %v6061_v56  ;;  %v3486_v44 = vrot.slane %v5461_v19, %v6061_v56 }
 0x1b3   : > { %v3467_v9 = vrot.slane %v3453_v36, %v6061_v56  ;;  %v3028_v47 = vcombine.high %v6808_v57, %v6808_v57  ;;  %v2753_v42 = vcombine.high %v2745_v4, %v2745_v4  ;;  %v2754_v7 = vcombine.high %v2752_v46, %v2752_v46 }
 0x1b4   : > { %v6820_v43 = vrot.slane %v2999_v12, %v6061_v56  ;;  %v3029_v6 = vcombine.high %v3013_v16, %v3013_v16  ;;  %v3761_v3 = vcombine.low %v3030_v31, %v3013_v16  ;;  %v2761_v29 = vrot.slane %v2745_v4, %v6061_v56 }
 0x1b5   : > { %v3468_v39 = vcombine.low %v3460_v30, %v3467_v9  ;;  %v2768_v34 = vrot.slane %v2752_v46, %v6061_v56  ;;  %v2775_v33 = vrot.slane %v2753_v42, %v6061_v56  ;;  %v2782_v1 = vrot.slane %v2754_v7, %v6061_v56 }
 0x1b6   : > { %v3501_v60 = vcombine.low %v3479_v62, %v3486_v44  ;;  %v3760_v35 = vcombine.low %v3020_v63, %v3028_v47  ;;  %v6827_v18 = vcombine.low %v6820_v43, %v3029_v6  ;;  %v3777_v23 = vrot.slane %v3761_v3, %v6061_v56 }
 0x1b7   : > { %3882 = vst.msk [vmem:[#allocation2 + $0x49] sm:$0x7f] %vm3875_vm7, %v3468_v39  ;;  %v3471_v25 = vcombine.low %v2761_v29, %v2775_v33  ;;  %v5462_v28 = vcombine.high %v2761_v29, %v2775_v33  ;;  %v3518_v26 = vcombine.low %v2768_v34, %v2782_v1  ;;  %v5463_v55 = vcombine.high %v2768_v34, %v2782_v1 }
 0x1b8   : > { %v3509_v41 = vrot.slane %v3501_v60, %v6061_v56  ;;  %v3770_v38 = vrot.slane %v3760_v35, %v6061_v56  ;;  %v3031_v0 = vcombine.high %v6820_v43, %v6820_v43  ;;  %v3784_v40 = vrot.slane %v6827_v18, %v6061_v56 }
 0x1b9   : > { %v3493_v45 = vrot.slane %v3471_v25, %v6061_v56  ;;  %v3500_v27 = vrot.slane %v5462_v28, %v6061_v56  ;;  %v3527_v14 = vrot.slane %v3518_v26, %v6061_v56  ;;  %v3534_v59 = vrot.slane %v5463_v55, %v6061_v56 }
 0x1ba   : > { %v6841_v17 = vcombine.low %v3770_v38, %v3777_v23 }
 0x1bb   : > { %v3502_v51 = vcombine.low %v3493_v45, %v3500_v27  ;;  %v3549_v5 = vcombine.low %v3527_v14, %v3534_v59 }
 0x1bc   : > { %v3800_v45 = vrot.slane %v6841_v17, %v6061_v56 }
 0x1bd   : > { %v3516_v24 = vrot.slane %v3502_v51, %v6061_v56  ;;  %v3557_v27 = vrot.slane %v3549_v5, %v6061_v56 }
 0x1bf   : > { %v2302_v22 = vpop.f32.mrf.mxu0  ;;  %v3517_v50 = vcombine.low %v3509_v41, %v3516_v24 }
 0x1c0   : > { %v2787_v37 = vcombine.high %v2302_v22, %v2302_v22  ;;  %v2794_v11 = vrot.slane %v2302_v22, %v6061_v56  ;;  %v2327_v48 = vpop.f32.mrf.mxu1 }
 0x1c1   : > { %v3032_v61 = vcombine.high %v2327_v48, %v2327_v48  ;;  %v3039_v10 = vrot.slane %v2327_v48, %v6061_v56  ;;  %v5582_v8 = vpop.f32.mrf.mxu0  ;;  %3883 = vst.msk [vmem:[#allocation2 + $0x51] sm:$0xff] %vm612_vm5, %v3517_v50 }
 0x1c2   : > { %v2801_v15 = vrot.slane %v2787_v37, %v6061_v56  ;;  %v2802_v13 = vcombine.high %v2794_v11, %v2794_v11  ;;  %v2810_v20 = vrot.slane %v2794_v11, %v6061_v56  ;;  %v5597_v58 = vpop.f32.mrf.mxu1 }
 0x1c3   : > { %v3046_v32 = vrot.slane %v3032_v61, %v6061_v56  ;;  %v3047_v49 = vcombine.high %v3039_v10, %v3039_v10  ;;  %v3055_v63 = vrot.slane %v3039_v10, %v6061_v56 }
 0x1c4   : > { %v2803_v2 = vcombine.high %v2801_v15, %v2801_v15  ;;  %v2817_v36 = vrot.slane %v2801_v15, %v6061_v56  ;;  %v2824_v21 = vrot.slane %v2802_v13, %v6061_v56  ;;  %v2832_v19 = vcombine.high %v2810_v20, %v2810_v20 }
 0x1c5   : > { %v3048_v30 = vcombine.high %v3046_v32, %v3046_v32  ;;  %v3062_v9 = vrot.slane %v3046_v32, %v6061_v56  ;;  %v3069_v12 = vrot.slane %v3047_v49, %v6061_v56  ;;  %v3077_v16 = vcombine.high %v3055_v63, %v3055_v63 }
 0x1c6   : > { %v6855_v31 = vrot.slane %v2803_v2, %v6061_v56  ;;  %v2833_v4 = vcombine.high %v2817_v36, %v2817_v36  ;;  %v2834_v46 = vcombine.high %v2824_v21, %v2824_v21  ;;  %v3520_v39 = vcombine.low %v2810_v20, %v2824_v21 }
 0x1c7   : > { %v3548_v62 = vrot.slane %v2832_v19, %v6061_v56  ;;  %v3076_v44 = vrot.slane %v3048_v30, %v6061_v56  ;;  %v3078_v47 = vcombine.high %v3062_v9, %v3062_v9  ;;  %v3079_v42 = vcombine.high %v3069_v12, %v3069_v12 }
 0x1c8   : > { %v3541_v7 = vrot.slane %v3520_v39, %v6061_v56  ;;  %v3566_v43 = vcombine.low %v2834_v46, %v2817_v36  ;;  %v3567_v6 = vcombine.low %v6855_v31, %v2833_v4  ;;  %v3763_v3 = vcombine.low %v3031_v0, %v3055_v63 }
 0x1c9   : > { %v3080_v29 = vcombine.high %v3076_v44, %v3076_v44  ;;  %v3809_v34 = vcombine.low %v3069_v12, %v3077_v16  ;;  %v3810_v33 = vcombine.low %v3079_v42, %v3062_v9  ;;  %v3811_v1 = vcombine.low %v3076_v44, %v3078_v47 }
 0x1ca   : > { %v3550_v60 = vcombine.low %v3541_v7, %v3548_v62  ;;  %v3576_v35 = vrot.slane %v3566_v43, %v6061_v56  ;;  %v3583_v25 = vrot.slane %v3567_v6, %v6061_v56  ;;  %v3791_v28 = vrot.slane %v3763_v3, %v6061_v56 }
 0x1cb   : > { %v3818_v26 = vrot.slane %v3809_v34, %v6061_v56  ;;  %v3825_v18 = vrot.slane %v3810_v33, %v6061_v56  ;;  %v3832_v55 = vrot.slane %v3811_v1, %v6061_v56  ;;  %v3839_v23 = vrot.slane %v3080_v29, %v6061_v56 }
 0x1cc   : > { %v3564_v14 = vrot.slane %v3550_v60, %v6061_v56  ;;  %v3793_v59 = vcombine.low %v3784_v40, %v3791_v28  ;;  %v5604_v41 = vpop.f32.mrf.mxu1  ;;  %v6873_v48 = vcombine.low %v3576_v35, %v3583_v25  ;;  %v2835_v24 = vcombine.high %v6855_v31, %v6855_v31 }
 0x1cd   : > { %v3840_v38 = vcombine.low %v3818_v26, %v3825_v18  ;;  %v3841_v51 = vcombine.low %v3832_v55, %v3839_v23  ;;  %v4480_v22 = vcombine.high %v5604_v41, %v5604_v41  ;;  %v4487_v37 = vrot.slane %v5604_v41, %v6061_v56 }
 0x1ce   : > { %v3565_v11 = vcombine.low %v3557_v27, %v3564_v14  ;;  %v3807_v0 = vrot.slane %v3793_v59, %v6061_v56  ;;  %v2307_v10 = vpop.f32.mrf.mxu0  ;;  %v4408_v5 = vpop.f32.mrf.mxu1 }
 0x1cf   : > { %v3848_v17 = vrot.slane %v3840_v38, %v6061_v56  ;;  %v3855_v61 = vrot.slane %v3841_v51, %v6061_v56  ;;  %v4494_v40 = vrot.slane %v4480_v22, %v6061_v56  ;;  %v4495_v8 = vcombine.high %v4487_v37, %v4487_v37 }
 0x1d0   : > { %3884 = vst.msk [vmem:[#allocation2 + $0x59] sm:$0x7f] %vm3875_vm7, %v3565_v11  ;;  %v3808_v15 = vcombine.low %v3800_v45, %v3807_v0  ;;  %v2836_v13 = vcombine.high %v2307_v10, %v2307_v10  ;;  %v2843_v20 = vrot.slane %v2307_v10, %v6061_v56  ;;  %v4503_v58 = vrot.slane %v4487_v37, %v6061_v56  ;;  %v5585_v32 = vpop.f32.mrf.mxu0 }
 0x1d1   : > { %v3856_v50 = vcombine.low %v3848_v17, %v3855_v61  ;;  %v4496_v49 = vcombine.high %v4494_v40, %v4494_v40  ;;  %v4510_v63 = vrot.slane %v4494_v40, %v6061_v56  ;;  %v4517_v2 = vrot.slane %v4495_v8, %v6061_v56 }
 0x1d2   : > { %3889 = vst.msk [vmem:[#allocation2 + $0x81] sm:$0xff] %vm612_vm5, %v3808_v15  ;;  %v2850_v36 = vrot.slane %v2836_v13, %v6061_v56  ;;  %v2851_v21 = vcombine.high %v2843_v20, %v2843_v20  ;;  %v2859_v19 = vrot.slane %v2843_v20, %v6061_v56  ;;  %v4431_v30 = vcombine.high %v4408_v5, %v4408_v5  ;;  %v2312_v4 = vpop.f32.mrf.mxu0  ;;  %v5607_v17 = vpop.f32.mrf.mxu1 }
 0x1d3   : > { %3890 = vst.msk [vmem:[#allocation2 + $0x89] sm:$0x7f] %vm3875_vm7, %v3856_v50  ;;  %v6891_v9 = vrot.slane %v4496_v49, %v6061_v56  ;;  %v4526_v12 = vcombine.high %v4510_v63, %v4510_v63  ;;  %v4674_v16 = vcombine.low %v4503_v58, %v4517_v2  ;;  %v5478_v31 = vcombine.high %v4503_v58, %v4517_v2 }
 0x1d4   : > { %v2852_v46 = vcombine.high %v2850_v36, %v2850_v36  ;;  %v2866_v39 = vrot.slane %v2850_v36, %v6061_v56  ;;  %v2873_v62 = vrot.slane %v2851_v21, %v6061_v56  ;;  %v2881_v44 = vcombine.high %v2859_v19, %v2859_v19  ;;  %v5588_v6 = vpop.f32.mrf.mxu0 }
 0x1d5   : > { %v3568_v47 = vcombine.low %v2835_v24, %v2859_v19  ;;  %v4676_v42 = vcombine.low %v4510_v63, %v6891_v9  ;;  %v4683_v7 = vrot.slane %v4674_v16, %v6061_v56  ;;  %v4690_v43 = vrot.slane %v5478_v31, %v6061_v56 }
 0x1d6   : > { %v2880_v3 = vrot.slane %v2852_v46, %v6061_v56  ;;  %v2882_v29 = vcombine.high %v2866_v39, %v2866_v39  ;;  %v2883_v34 = vcombine.high %v2873_v62, %v2873_v62  ;;  %v3569_v33 = vcombine.low %v2873_v62, %v2881_v44  ;;  %v6902_v28 = vpop.f32.mrf.mxu0 }
 0x1d7   : > { %v3590_v1 = vrot.slane %v3568_v47, %v6061_v56  ;;  %v4697_v60 = vrot.slane %v4676_v42, %v6061_v56  ;;  %v4704_v35 = vrot.slane %v4526_v12, %v6061_v56  ;;  %v4705_v25 = vcombine.low %v4683_v7, %v4690_v43 }
 0x1d8   : > { %v3597_v26 = vrot.slane %v3569_v33, %v6061_v56  ;;  %v3615_v18 = vcombine.low %v2883_v34, %v2866_v39  ;;  %v3616_v55 = vcombine.low %v2880_v3, %v2882_v29  ;;  %v4438_v23 = vrot.slane %v4408_v5, %v6061_v56  ;;  %v5591_v59 = vpop.f32.mrf.mxu0 }
 0x1d9   : > { %v3606_v45 = vrot.slane %v6873_v48, %v6061_v56  ;;  %v4706_v27 = vcombine.low %v4697_v60, %v4704_v35  ;;  %v4445_v14 = vrot.slane %v4431_v30, %v6061_v56  ;;  %v4713_v38 = vrot.slane %v4705_v25, %v6061_v56 }
 0x1da   : > { %v3599_v41 = vcombine.low %v3590_v1, %v3597_v26  ;;  %v4446_v51 = vcombine.high %v4438_v23, %v4438_v23  ;;  %v2884_v22 = vcombine.high %v2880_v3, %v2880_v3  ;;  %v3624_v37 = vrot.slane %v3615_v18, %v6061_v56 }
 0x1db   : > { %v3631_v11 = vrot.slane %v3616_v55, %v6061_v56  ;;  %v4720_v0 = vrot.slane %v4706_v27, %v6061_v56  ;;  %v4447_v24 = vcombine.high %v4445_v14, %v4445_v14  ;;  %v4454_v48 = vrot.slane %v4438_v23, %v6061_v56  ;;  %v4418_v55 = vpop.f32.mrf.mxu1 }
 0x1dc   : > { %v3613_v61 = vrot.slane %v3599_v41, %v6061_v56  ;;  %v4468_v10 = vrot.slane %v4446_v51, %v6061_v56  ;;  %v2885_v40 = vcombine.high %v2312_v4, %v2312_v4  ;;  %v4461_v5 = vrot.slane %v4445_v14, %v6061_v56 }
 0x1dd   : > { %v4721_v8 = vcombine.low %v4713_v38, %v4720_v0  ;;  %v4475_v15 = vrot.slane %v4447_v24, %v6061_v56  ;;  %v2892_v13 = vrot.slane %v2312_v4, %v6061_v56  ;;  %v4578_v32 = vcombine.high %v5607_v17, %v5607_v17 }
 0x1de   : > { %v3614_v20 = vcombine.low %v3606_v45, %v3613_v61  ;;  %v4625_v58 = vcombine.low %v4454_v48, %v4468_v10  ;;  %v5476_v50 = vcombine.high %v4454_v48, %v4468_v10  ;;  %v2899_v2 = vrot.slane %v2885_v40, %v6061_v56 }
 0x1df   : > { %4725 = vst.msk [vmem:[#allocation2 + $0x9] sm:$0x7f] %vm3875_vm7, %v4721_v8  ;;  %v4627_v49 = vcombine.low %v4461_v5, %v4475_v15  ;;  %v5477_v63 = vcombine.high %v4461_v5, %v4475_v15  ;;  %v2900_v36 = vcombine.high %v2892_v13, %v2892_v13  ;;  %v2908_v30 = vrot.slane %v2892_v13, %v6061_v56 }
 0x1e0   : > { %3885 = vst.msk [vmem:[#allocation2 + $0x61] sm:$0xff] %vm612_vm5, %v3614_v20  ;;  %v4635_v21 = vrot.slane %v4625_v58, %v6061_v56  ;;  %v4642_v19 = vrot.slane %v5476_v50, %v6061_v56  ;;  %v4585_v12 = vrot.slane %v5607_v17, %v6061_v56  ;;  %v2901_v4 = vcombine.high %v2899_v2, %v2899_v2 }
 0x1e1   : > { %v4649_v16 = vrot.slane %v4627_v49, %v6061_v56  ;;  %v4656_v31 = vrot.slane %v5477_v63, %v6061_v56  ;;  %v2922_v39 = vrot.slane %v2900_v36, %v6061_v56  ;;  %v3617_v62 = vcombine.low %v2884_v22, %v2908_v30 }
 0x1e2   : > { %v4657_v46 = vcombine.low %v4635_v21, %v4642_v19  ;;  %v4592_v44 = vrot.slane %v4578_v32, %v6061_v56  ;;  %v2915_v42 = vrot.slane %v2899_v2, %v6061_v56  ;;  %v2929_v7 = vrot.slane %v2901_v4, %v6061_v56 }
 0x1e3   : > { %v4658_v47 = vcombine.low %v4649_v16, %v4656_v31  ;;  %v4593_v43 = vcombine.high %v4585_v12, %v4585_v12  ;;  %v3646_v6 = vcombine.low %v3624_v37, %v3631_v11  ;;  %v3638_v3 = vrot.slane %v3617_v62, %v6061_v56 }
 0x1e4   : > { %v3645_v29 = vrot.slane %v2922_v39, %v6061_v56  ;;  %v5464_v34 = vcombine.high %v2908_v30, %v2922_v39  ;;  %v4665_v33 = vrot.slane %v4657_v46, %v6061_v56  ;;  %v3664_v60 = vcombine.low %v2915_v42, %v2929_v7 }
 0x1e5   : > { %v4672_v1 = vrot.slane %v4658_v47, %v6061_v56  ;;  %v5465_v25 = vcombine.high %v2915_v42, %v2929_v7  ;;  %v4594_v26 = vcombine.high %v4592_v44, %v4592_v44  ;;  %v4615_v18 = vrot.slane %v4593_v43, %v6061_v56 }
 0x1e6   : > { %v3647_v35 = vcombine.low %v3638_v3, %v3645_v29  ;;  %v3742_v23 = vrot.slane %v6808_v57, %v6061_v56  ;;  %v4601_v27 = vrot.slane %v4585_v12, %v6061_v56  ;;  %v3654_v14 = vrot.slane %v3646_v6, %v6061_v56 }
 0x1e7   : > { %v4673_v45 = vcombine.low %v4665_v33, %v4672_v1  ;;  %v6943_v41 = vrot.slane %v5464_v34, %v6061_v56  ;;  %v4624_v38 = vcombine.high %v4615_v18, %v4615_v18  ;;  %v6947_v51 = vrot.slane %v3664_v60, %v6061_v56 }
 0x1e8   : > { %v3661_v59 = vrot.slane %v3647_v35, %v6061_v56  ;;  %v4608_v22 = vrot.slane %v4592_v44, %v6061_v56  ;;  %v4529_v37 = vcombine.high %v4418_v55, %v4418_v55  ;;  %v4536_v11 = vrot.slane %v4418_v55, %v6061_v56 }
 0x1e9   : > { %4724 = vst.msk [vmem:[#allocation2 + $0x1] sm:$0xff] %vm612_vm5, %v4673_v45  ;;  %v6952_v24 = vrot.slane %v5465_v25, %v6061_v56  ;;  %v4622_v17 = vrot.slane %v4594_v26, %v6061_v56  ;;  %v2934_v61 = vcombine.high %v6902_v28, %v6902_v28  ;;  %v4623_v48 = vcombine.high %v4601_v27, %v4601_v27 }
 0x1ea   : > { %v3662_v0 = vcombine.low %v3654_v14, %v3661_v59  ;;  %v4543_v10 = vrot.slane %v4529_v37, %v6061_v56  ;;  %v4544_v40 = vcombine.high %v4536_v11, %v4536_v11  ;;  %v4552_v8 = vrot.slane %v4536_v11, %v6061_v56 }
 0x1eb   : > { %v4777_v5 = vcombine.low %v4624_v38, %v4608_v22  ;;  %v4528_v15 = vcombine.high %v6891_v9, %v6891_v9  ;;  %v2941_v13 = vrot.slane %v6902_v28, %v6061_v56  ;;  %v2948_v20 = vrot.slane %v2934_v61, %v6061_v56 }
 0x1ec   : > { %3886 = vst.msk [vmem:[#allocation2 + $0x69] sm:$0x7f] %vm3875_vm7, %v3662_v0  ;;  %v4545_v58 = vcombine.high %v4543_v10, %v4543_v10  ;;  %v4559_v50 = vrot.slane %v4543_v10, %v6061_v56  ;;  %v4566_v32 = vrot.slane %v4544_v40, %v6061_v56  ;;  %v4574_v49 = vcombine.high %v4552_v8, %v4552_v8 }
 0x1ed   : > { %v3695_v63 = vcombine.low %v6943_v41, %v6947_v51  ;;  %v4726_v2 = vcombine.low %v4528_v15, %v4552_v8  ;;  %v2949_v36 = vcombine.high %v2941_v13, %v2941_v13  ;;  %v2950_v21 = vcombine.high %v2948_v20, %v2948_v20 }
 0x1ee   : > { %v4573_v19 = vrot.slane %v4545_v58, %v6061_v56  ;;  %v4575_v9 = vcombine.high %v4559_v50, %v4559_v50  ;;  %v4576_v30 = vcombine.high %v4566_v32, %v4566_v32  ;;  %v4727_v12 = vcombine.low %v4566_v32, %v4574_v49 }
 0x1ef   : > { %v4776_v28 = vcombine.low %v4615_v18, %v4623_v48  ;;  %v4798_v16 = vrot.slane %v4777_v5, %v6061_v56  ;;  %v4805_v31 = vrot.slane %v4622_v17, %v6061_v56  ;;  %v4736_v4 = vrot.slane %v4726_v2, %v6061_v56 }
 0x1f0   : > { %v4577_v46 = vcombine.high %v4573_v19, %v4573_v19  ;;  %v4728_v39 = vcombine.low %v4576_v30, %v4559_v50  ;;  %v4729_v62 = vcombine.low %v4573_v19, %v4575_v9  ;;  %v4743_v44 = vrot.slane %v4727_v12, %v6061_v56 }
 0x1f1   : > { %v2957_v47 = vrot.slane %v2941_v13, %v6061_v56  ;;  %v2964_v42 = vrot.slane %v2948_v20, %v6061_v56  ;;  %v2971_v7 = vrot.slane %v2949_v36, %v6061_v56  ;;  %v2978_v43 = vrot.slane %v2950_v21, %v6061_v56 }
 0x1f2   : > { %v4750_v6 = vrot.slane %v4728_v39, %v6061_v56  ;;  %v4757_v3 = vrot.slane %v4729_v62, %v6061_v56  ;;  %v4758_v29 = vcombine.low %v4736_v4, %v4743_v44  ;;  %v4775_v34 = vcombine.low %v4577_v46, %v4601_v27 }
 0x1f3   : > { %v3666_v33 = vcombine.low %v2957_v47, %v2971_v7  ;;  %v5466_v1 = vcombine.high %v2957_v47, %v2971_v7  ;;  %v3713_v60 = vcombine.low %v2964_v42, %v2978_v43  ;;  %v5467_v35 = vcombine.high %v2964_v42, %v2978_v43 }
 0x1f4   : > { %v4791_v25 = vrot.slane %v4776_v28, %v6061_v56  ;;  %v4807_v26 = vcombine.low %v4798_v16, %v4805_v31  ;;  %v4759_v18 = vcombine.low %v4750_v6, %v4757_v3  ;;  %v4784_v55 = vrot.slane %v4775_v34, %v6061_v56 }
 0x1f5   : > { %v3694_v45 = vrot.slane %v3666_v33, %v6061_v56  ;;  %v3721_v14 = vrot.slane %v5466_v1, %v6061_v56  ;;  %v3728_v59 = vrot.slane %v3713_v60, %v6061_v56  ;;  %v3735_v41 = vrot.slane %v5467_v35, %v6061_v56 }
 0x1f6   : > { %v4766_v27 = vrot.slane %v4758_v29, %v6061_v56  ;;  %v4773_v38 = vrot.slane %v4759_v18, %v6061_v56  ;;  %v4806_v51 = vcombine.low %v4784_v55, %v4791_v25  ;;  %v4821_v0 = vrot.slane %v4807_v26, %v6061_v56 }
 0x1f7   : > { %v3696_v22 = vcombine.low %v6952_v24, %v3694_v45  ;;  %v3743_v37 = vcombine.low %v3721_v14, %v3728_v59  ;;  %v3744_v11 = vcombine.low %v3735_v41, %v3742_v23  ;;  %v3703_v48 = vrot.slane %v3695_v63, %v6061_v56 }
 0x1f8   : > { %v4774_v17 = vcombine.low %v4766_v27, %v4773_v38  ;;  %v4814_v61 = vrot.slane %v4806_v51, %v6061_v56 }
 0x1f9   : > { %v3710_v10 = vrot.slane %v3696_v22, %v6061_v56  ;;  %v3751_v40 = vrot.slane %v3743_v37, %v6061_v56  ;;  %v3758_v8 = vrot.slane %v3744_v11, %v6061_v56 }
 0x1fa   : > { %v4822_v5 = vcombine.low %v4814_v61, %v4821_v0  ;;  %4826 = vst.msk [vmem:[#allocation2 + $0x91] sm:$0xff] %vm612_vm5, %v4774_v17  ;;  %4831 = sbr.rel (%p5479_p11) target bundleno = 514 (0x202), region = 44 }
 0x1fb   : > { %v3711_v24 = vcombine.low %v3703_v48, %v3710_v10  ;;  %v3759_v15 = vcombine.low %v3751_v40, %v3758_v8 }
 0x1fc   : > { %4827 = vst.msk [vmem:[#allocation2 + $0x99] sm:$0x7f] %vm3875_vm7, %v4822_v5 }
 0x1fd   : > { %3887 = vst.msk [vmem:[#allocation2 + $0x71] sm:$0xff] %vm612_vm5, %v3711_v24 }
 0x1fe   : > { %3888 = vst.msk [vmem:[#allocation2 + $0x79] sm:$0x7f] %vm3875_vm7, %v3759_v15 }
 0x1ff   : > { %v4833_v57 = vld [vmem:[#allocation2 + $0x21] sm:$0xff]  ;;  %v4834_v23 = vld [vmem:[#allocation2 + $0x29] sm:$0x7f] }
 0x200   : > { %4835 = vst.msk [vmem:[#allocation2 + $0x1] sm:$0xff] %vm612_vm5, %v4833_v57 }
 0x201   : > { %4836 = vst.msk [vmem:[#allocation2 + $0x9] sm:$0x7f] %vm3875_vm7, %v4834_v23 }
 0x202 PF: > { %p5480_p12 = scmp.ne.s32.totalorder %s5712_s18, 1 }
 0x204   : > { %4840 = sbr.rel (%p5480_p12) target bundleno = 524 (0x20c), region = 48 }
 0x209   : > { %v4842_v56 = vld [vmem:[#allocation2 + $0x71] sm:$0xff]  ;;  %v4843_v13 = vld [vmem:[#allocation2 + $0x79] sm:$0x7f] }
 0x20a   : > { %4844 = vst.msk [vmem:[#allocation2 + $0x91] sm:$0xff] %vm612_vm5, %v4842_v56 }
 0x20b   : > { %4845 = vst.msk [vmem:[#allocation2 + $0x99] sm:$0x7f] %vm3875_vm7, %v4843_v13 }
 0x20c PF: > { %v7008_v20 = vld [vmem:[#allocation2 + $0x28] sm:$0xff]  ;;  %v7010_v58 = vld [vmem:[#allocation2 + $0x18] sm:$0xff]  ;;  %v4848_v50 = vld [vmem:[#allocation2 + $0x22] sm:$0x1]  ;;  %vm4856_vm8 = vcmask 57344   ;;  %5608 = vmatprep.subr.mxu1 %v5956_v54  ;;  %s5735_s15 = smov 16  }
 0x20d   : > { %4955 = vrot.lane.b32.xlu1 %v7008_v20, %s5735_s15  ;;  %4905 = vrot.lane.b32.xlu0 %v7010_v58, %s5731_s17  ;;  %4859 = vst.msk [vmem:[#allocation2 + $0x20] sm:$0x1] %vm4856_vm8, %v4848_v50  ;;  %v4847_v32 = vld [vmem:[#allocation2 + $0x12] sm:$0x1]  ;;  %v4850_v63 = vld [vmem:[#allocation2 + $0x42] sm:$0x1] }
 0x20e   : > { %v4849_v49 = vld [vmem:[#allocation2 + $0x32] sm:$0x1]  ;;  %4858 = vst.msk [vmem:[#allocation2 + $0x10] sm:$0x1] %vm4856_vm8, %v4847_v32  ;;  %5609 = vmatpush3.msra.mxu1 %v5956_v54  ;;  %4861 = vst.msk [vmem:[#allocation2 + $0x40] sm:$0x1] %vm4856_vm8, %v4850_v63 }
 0x20f   : > { %4860 = vst.msk [vmem:[#allocation2 + $0x30] sm:$0x1] %vm4856_vm8, %v4849_v49  ;;  %v4851_v2 = vld [vmem:[#allocation2 + $0x52] sm:$0x1]  ;;  %v4852_v36 = vld [vmem:[#allocation2 + $0x62] sm:$0x1]  ;;  %5610 = vmatprep.subr.mxu1 %v5951_v53 }
 0x210   : > { %4862 = vst.msk [vmem:[#allocation2 + $0x50] sm:$0x1] %vm4856_vm8, %v4851_v2  ;;  %4863 = vst.msk [vmem:[#allocation2 + $0x60] sm:$0x1] %vm4856_vm8, %v4852_v36  ;;  %v4853_v21 = vld [vmem:[#allocation2 + $0x72] sm:$0x1]  ;;  %5611 = vmatpush3.msra.mxu1 %v5951_v53 }
 0x211   : > { %4909 = vrot.lane.b32.xlu1 %v7008_v20, %s5731_s17  ;;  %4864 = vst.msk [vmem:[#allocation2 + $0x70] sm:$0x1] %vm4856_vm8, %v4853_v21  ;;  %v4854_v19 = vld [vmem:[#allocation2 + $0x82] sm:$0x1]  ;;  %v4855_v54 = vld [vmem:[#allocation2 + $0x92] sm:$0x1]  ;;  %5612 = vmatprep.subr.mxu1 %v5946_v52 }
 0x212   : > { %4865 = vst.msk [vmem:[#allocation2 + $0x80] sm:$0x1] %vm4856_vm8, %v4854_v19  ;;  %4866 = vst.msk [vmem:[#allocation2 + $0x90] sm:$0x1] %vm4856_vm8, %v4855_v54  ;;  %v4846_v9 = vld [vmem:[#allocation2 + $0x2] sm:$0x1]  ;;  %5613 = vmatpush3.msra.mxu1 %v5946_v52 }
 0x213   : > { %4857 = vst.msk [vmem:[#allocation2] sm:$0x1] %vm4856_vm8, %v4846_v9  ;;  %v7039_v12 = vld [vmem:[#allocation2 + $0x38] sm:$0xff]  ;;  %v7051_v52 = vld [vmem:[#allocation2 + $0x48] sm:$0xff]  ;;  %vm5017_vm9 = vcmask 130048   ;;  %vm5034_vm10 = vcmask 195584  }
 0x214   : > { %v7034_v30 = vld [vmem:[#allocation2 + $0x20] sm:$0xff]  ;;  %v7063_v31 = vld [vmem:[#allocation2 + $0x58] sm:$0xff]  ;;  %v7075_v46 = vld [vmem:[#allocation2 + $0x68] sm:$0xff] }
 0x215   : > { %4953 = vrot.lane.b32.xlu1 %v7034_v30, %s5735_s15  ;;  %v4869_v53 = vld [vmem:[#allocation2 + $0x10] sm:$0xff]  ;;  %v7057_v16 = vld [vmem:[#allocation2 + $0x40] sm:$0xff]  ;;  %v7087_v62 = vld [vmem:[#allocation2 + $0x78] sm:$0xff] }
 0x216   : > { %4903 = vrot.lane.b32.xlu0 %v4869_v53, %s5731_s17  ;;  %v7045_v28 = vld [vmem:[#allocation2 + $0x30] sm:$0xff]  ;;  %v4884_v47 = vld [vmem:[#allocation2 + $0x88] sm:$0xff]  ;;  %v4886_v7 = vld [vmem:[#allocation2 + $0x98] sm:$0xff] }
 0x217   : > { %v7069_v4 = vld [vmem:[#allocation2 + $0x50] sm:$0xff]  ;;  %v7081_v39 = vld [vmem:[#allocation2 + $0x60] sm:$0xff]  ;;  %v4868_v34 = vld [vmem:[#allocation2 + $0x8] sm:$0xff] }
 0x218   : > { %v7093_v44 = vld [vmem:[#allocation2 + $0x70] sm:$0xff] }
 0x219   : > { %4959 = vrot.lane.b32.xlu1 %v7039_v12, %s5735_s15  ;;  %v4883_v42 = vld [vmem:[#allocation2 + $0x80] sm:$0xff]  ;;  %v4885_v43 = vld [vmem:[#allocation2 + $0x90] sm:$0xff] }
 0x21a   : > { %4907 = vrot.lane.b32.xlu0 %v7034_v30, %s5731_s17  ;;  %v4867_v33 = vld [vmem:[#allocation2] sm:$0xff] }
 0x21d   : > { %4913 = vrot.lane.b32.xlu1 %v7039_v12, %s5731_s17 }
 0x21e   : > { %4957 = vrot.lane.b32.xlu0 %v7045_v28, %s5735_s15 }
 0x221   : > { %4963 = vrot.lane.b32.xlu1 %v7051_v52, %s5735_s15 }
 0x222   : > { %4911 = vrot.lane.b32.xlu0 %v7045_v28, %s5731_s17 }
 0x225   : > { %4917 = vrot.lane.b32.xlu1 %v7051_v52, %s5731_s17 }
 0x226   : > { %4961 = vrot.lane.b32.xlu0 %v7057_v16, %s5735_s15 }
 0x229   : > { %4967 = vrot.lane.b32.xlu1 %v7063_v31, %s5735_s15 }
 0x22a   : > { %4915 = vrot.lane.b32.xlu0 %v7057_v16, %s5731_s17 }
 0x22d   : > { %4921 = vrot.lane.b32.xlu1 %v7063_v31, %s5731_s17 }
 0x22e   : > { %4965 = vrot.lane.b32.xlu0 %v7069_v4, %s5735_s15 }
 0x231   : > { %4971 = vrot.lane.b32.xlu1 %v7075_v46, %s5735_s15 }
 0x232   : > { %4919 = vrot.lane.b32.xlu0 %v7069_v4, %s5731_s17 }
 0x235   : > { %4925 = vrot.lane.b32.xlu1 %v7075_v46, %s5731_s17 }
 0x236   : > { %4969 = vrot.lane.b32.xlu0 %v7081_v39, %s5735_s15 }
 0x239   : > { %4975 = vrot.lane.b32.xlu1 %v7087_v62, %s5735_s15 }
 0x23a   : > { %4923 = vrot.lane.b32.xlu0 %v7081_v39, %s5731_s17 }
 0x23d   : > { %4929 = vrot.lane.b32.xlu1 %v7087_v62, %s5731_s17 }
 0x23e   : > { %4973 = vrot.lane.b32.xlu0 %v7093_v44, %s5735_s15 }
 0x241   : > { %4979 = vrot.lane.b32.xlu1 %v4884_v47, %s5735_s15 }
 0x242   : > { %4927 = vrot.lane.b32.xlu0 %v7093_v44, %s5731_s17 }
 0x245   : > { %4933 = vrot.lane.b32.xlu1 %v4884_v47, %s5731_s17 }
 0x246   : > { %4977 = vrot.lane.b32.xlu0 %v4883_v42, %s5735_s15 }
 0x249   : > { %4983 = vrot.lane.b32.xlu1 %v4886_v7, %s5735_s15 }
 0x24a   : > { %4931 = vrot.lane.b32.xlu0 %v4883_v42, %s5731_s17 }
 0x24e   : > { %4981 = vrot.lane.b32.xlu0 %v4885_v43, %s5735_s15 }
 0x27f   : > { %v4956_v6 = vpop.permute.xlu1 %4955  ;;  %v4906_v29 = vpop.permute.xlu0 %4905 }
 0x280   : > { %v5002_v60 = vsel %vm612_vm5, %v4868_v34, %v4906_v29 }
 0x281   : > { %v5019_v18 = vsel %vm5017_vm9, %v5002_v60, %v4956_v6 }
 0x283   : > { %v4910_v3 = vpop.permute.xlu1 %4909 }
 0x284   : > { %v5004_v27 = vsel %vm612_vm5, %v7010_v58, %v4910_v3 }
 0x287   : > { %v4954_v1 = vpop.permute.xlu1 %4953 }
 0x288   : > { %v4904_v35 = vpop.permute.xlu0 %4903 }
 0x289   : > { %v5001_v25 = vsel %vm612_vm5, %v4867_v33, %v4904_v35 }
 0x28a   : > { %v5018_v26 = vsel %vm5017_vm9, %v5001_v25, %v4954_v1 }
 0x28b   : > { %5614 = vmatprep.mubr.msk.f32.mxu1 %vm5034_vm10, %v5018_v26  ;;  %v4960_v55 = vpop.permute.xlu1 %4959 }
 0x28c   : > { %v4908_v45 = vpop.permute.xlu0 %4907  ;;  %5615 = vmatmul.mubr.msk.f32.vlgmr.msra.gmra.mxu1 %vm5034_vm10, %v5019_v18  ;;  %v5021_v51 = vsel %vm5017_vm9, %v5004_v27, %v4960_v55 }
 0x28d   : > { %v5003_v59 = vsel %vm612_vm5, %v4869_v53, %v4908_v45 }
 0x28f   : > { %v4914_v14 = vpop.permute.xlu1 %4913 }
 0x290   : > { %v4958_v41 = vpop.permute.xlu0 %4957  ;;  %v5006_v11 = vsel %vm612_vm5, %v7008_v20, %v4914_v14 }
 0x291   : > { %v5020_v38 = vsel %vm5017_vm9, %v5003_v59, %v4958_v41 }
 0x292   : > { %5617 = vmatprep.mubr.msk.f32.mxu1 %vm5034_vm10, %v5020_v38 }
 0x293   : > { %5618 = vmatmul.mubr.msk.f32.gmra.mxu1 %vm5034_vm10, %v5021_v51  ;;  %v4964_v22 = vpop.permute.xlu1 %4963 }
 0x294   : > { %v4912_v37 = vpop.permute.xlu0 %4911  ;;  %v5023_v10 = vsel %vm5017_vm9, %v5006_v11, %v4964_v22 }
 0x295   : > { %v5005_v17 = vsel %vm612_vm5, %v7034_v30, %v4912_v37 }
 0x297   : > { %v4918_v0 = vpop.permute.xlu1 %4917 }
 0x298   : > { %v4962_v61 = vpop.permute.xlu0 %4961  ;;  %v5008_v5 = vsel %vm612_vm5, %v7039_v12, %v4918_v0 }
 0x299   : > { %v5022_v48 = vsel %vm5017_vm9, %v5005_v17, %v4962_v61 }
 0x29a   : > { %5620 = vmatprep.mubr.msk.f32.mxu1 %vm5034_vm10, %v5022_v48 }
 0x29b   : > { %5621 = vmatmul.mubr.msk.f32.gmra.mxu1 %vm5034_vm10, %v5023_v10  ;;  %v4968_v40 = vpop.permute.xlu1 %4967 }
 0x29c   : > { %v4916_v8 = vpop.permute.xlu0 %4915  ;;  %v5025_v56 = vsel %vm5017_vm9, %v5008_v5, %v4968_v40 }
 0x29d   : > { %v5007_v15 = vsel %vm612_vm5, %v7045_v28, %v4916_v8 }
 0x29f   : > { %v4922_v24 = vpop.permute.xlu1 %4921 }
 0x2a0   : > { %v4966_v57 = vpop.permute.xlu0 %4965  ;;  %v5010_v58 = vsel %vm612_vm5, %v7051_v52, %v4922_v24 }
 0x2a1   : > { %v5024_v23 = vsel %vm5017_vm9, %v5007_v15, %v4966_v57 }
 0x2a2   : > { %5623 = vmatprep.mubr.msk.f32.mxu1 %vm5034_vm10, %v5024_v23 }
 0x2a3   : > { %5624 = vmatmul.mubr.msk.f32.gmra.mxu1 %vm5034_vm10, %v5025_v56  ;;  %v4972_v13 = vpop.permute.xlu1 %4971 }
 0x2a4   : > { %v4920_v20 = vpop.permute.xlu0 %4919  ;;  %v5027_v2 = vsel %vm5017_vm9, %v5010_v58, %v4972_v13 }
 0x2a5   : > { %v5009_v32 = vsel %vm612_vm5, %v7057_v16, %v4920_v20 }
 0x2a7   : > { %v4926_v50 = vpop.permute.xlu1 %4925 }
 0x2a8   : > { %v4970_v49 = vpop.permute.xlu0 %4969  ;;  %v5012_v19 = vsel %vm612_vm5, %v7063_v31, %v4926_v50 }
 0x2a9   : > { %v5026_v63 = vsel %vm5017_vm9, %v5009_v32, %v4970_v49 }
 0x2aa   : > { %5626 = vmatprep.mubr.msk.f32.mxu1 %vm5034_vm10, %v5026_v63 }
 0x2ab   : > { %5627 = vmatmul.mubr.msk.f32.gmra.mxu1 %vm5034_vm10, %v5027_v2  ;;  %v4976_v36 = vpop.permute.xlu1 %4975 }
 0x2ac   : > { %v4924_v21 = vpop.permute.xlu0 %4923  ;;  %v5029_v12 = vsel %vm5017_vm9, %v5012_v19, %v4976_v36 }
 0x2ad   : > { %v5011_v9 = vsel %vm612_vm5, %v7069_v4, %v4924_v21 }
 0x2af   : > { %v4930_v54 = vpop.permute.xlu1 %4929 }
 0x2b0   : > { %v4974_v30 = vpop.permute.xlu0 %4973  ;;  %v5014_v16 = vsel %vm612_vm5, %v7075_v46, %v4930_v54 }
 0x2b1   : > { %v5028_v53 = vsel %vm5017_vm9, %v5011_v9, %v4974_v30 }
 0x2b2   : > { %5629 = vmatprep.mubr.msk.f32.mxu1 %vm5034_vm10, %v5028_v53 }
 0x2b3   : > { %5630 = vmatmul.mubr.msk.f32.gmra.mxu1 %vm5034_vm10, %v5029_v12  ;;  %v4980_v28 = vpop.permute.xlu1 %4979 }
 0x2b4   : > { %v4928_v52 = vpop.permute.xlu0 %4927  ;;  %v5031_v7 = vsel %vm5017_vm9, %v5014_v16, %v4980_v28 }
 0x2b5   : > { %v5013_v31 = vsel %vm612_vm5, %v7081_v39, %v4928_v52 }
 0x2b7   : > { %v4934_v42 = vpop.permute.xlu1 %4933 }
 0x2b8   : > { %v4978_v47 = vpop.permute.xlu0 %4977  ;;  %v5016_v6 = vsel %vm612_vm5, %v7087_v62, %v4934_v42 }
 0x2b9   : > { %v5030_v4 = vsel %vm5017_vm9, %v5013_v31, %v4978_v47 }
 0x2ba   : > { %5632 = vmatprep.mubr.msk.f32.mxu1 %vm5034_vm10, %v5030_v4 }
 0x2bb   : > { %5633 = vmatmul.mubr.msk.f32.gmra.mxu1 %vm5034_vm10, %v5031_v7  ;;  %v4984_v3 = vpop.permute.xlu1 %4983 }
 0x2bc   : > { %v4932_v43 = vpop.permute.xlu0 %4931  ;;  %v5033_v34 = vsel %vm5017_vm9, %v5016_v6, %v4984_v3 }
 0x2bd   : > { %v5015_v46 = vsel %vm612_vm5, %v7093_v44, %v4932_v43 }
 0x2c0   : > { %v4982_v29 = vpop.permute.xlu0 %4981 }
 0x2c1   : > { %v5032_v39 = vsel %vm5017_vm9, %v5015_v46, %v4982_v29 }
 0x2c2   : > { %5635 = vmatprep.mubr.msk.f32.mxu1 %vm5034_vm10, %v5032_v39 }
 0x2c3   : > { %5636 = vmatmul.mubr.msk.f32.gmra.mxu1 %vm5034_vm10, %v5033_v34 }
 0x34c   : > { %v5616_v33 = vpop.f32.mrf.mxu1 }
 0x34e   : > { %v5149_v1 = vpop.f32.mrf.mxu1 }
 0x34f   : > { %5228 = vxpose.xlu0.b32.start [1/16] (narrow) %v5149_v1, 8 }
 0x353   : > { %5229 = vxpose.xlu0.b32.cont [2/16] (narrow) %v5616_v33, 8  ;;  %v5619_v60 = vpop.f32.mrf.mxu1 }
 0x355   : > { %v5159_v35 = vpop.f32.mrf.mxu1 }
 0x357   : > { %5230 = vxpose.xlu0.b32.cont [3/16] (narrow) %v5159_v35, 8 }
 0x35b   : > { %5231 = vxpose.xlu0.b32.cont [4/16] (narrow) %v5619_v60, 8  ;;  %v5622_v62 = vpop.f32.mrf.mxu1 }
 0x35d   : > { %v5169_v25 = vpop.f32.mrf.mxu1 }
 0x35f   : > { %5232 = vxpose.xlu0.b32.cont [5/16] (narrow) %v5169_v25, 8 }
 0x363   : > { %5233 = vxpose.xlu0.b32.cont [6/16] (narrow) %v5622_v62, 8  ;;  %v5625_v44 = vpop.f32.mrf.mxu1 }
 0x365   : > { %v5179_v26 = vpop.f32.mrf.mxu1 }
 0x367   : > { %5234 = vxpose.xlu0.b32.cont [7/16] (narrow) %v5179_v26, 8 }
 0x36b   : > { %5235 = vxpose.xlu0.b32.cont [8/16] (narrow) %v5625_v44, 8  ;;  %v5628_v18 = vpop.f32.mrf.mxu1 }
 0x36d   : > { %v5189_v55 = vpop.f32.mrf.mxu1 }
 0x36f   : > { %5236 = vxpose.xlu0.b32.cont [9/16] (narrow) %v5189_v55, 8 }
 0x373   : > { %5237 = vxpose.xlu0.b32.cont [10/16] (narrow) %v5628_v18, 8  ;;  %v5631_v45 = vpop.f32.mrf.mxu1 }
 0x375   : > { %v5199_v14 = vpop.f32.mrf.mxu1 }
 0x377   : > { %5238 = vxpose.xlu0.b32.cont [11/16] (narrow) %v5199_v14, 8 }
 0x37b   : > { %5239 = vxpose.xlu0.b32.cont [12/16] (narrow) %v5631_v45, 8  ;;  %v5634_v59 = vpop.f32.mrf.mxu1 }
 0x37d   : > { %v5209_v41 = vpop.f32.mrf.mxu1 }
 0x37f   : > { %5240 = vxpose.xlu0.b32.cont [13/16] (narrow) %v5209_v41, 8 }
 0x383   : > { %5241 = vxpose.xlu0.b32.cont [14/16] (narrow) %v5634_v59, 8  ;;  %v5637_v27 = vpop.f32.mrf.mxu1 }
 0x385   : > { %v5219_v38 = vpop.f32.mrf.mxu1 }
 0x387   : > { %5242 = vxpose.xlu0.b32.cont [15/16] (narrow) %v5219_v38, 8 }
 0x38b   : > { %5243 = vxpose.xlu0.b32.end [16/16] (narrow) %v5637_v27, 8 }
 0x3cb   : > { %v5244_v51 = vpop.trf.xlu0 }
 0x3cc   : > { %5260 = vst [vmem:[%s5835_s16] sm:$0xff] %v5244_v51 }
 0x3cd PF: > { %s15_s22 = sadd.s32 1, %s5728_s22   ;;  %s7191_s18 = smov %s5720_s20 }
 0x3ce   : > { %p12_p13 = scmp.ge.s32.totalorder %s15_s22, 6   ;;  %s7192_s19 = smov %s5724_s21 }
 0x3cf   : > { %s7193_s20 = smov %s7196_s23  ;;  %s7194_s21 = smov %s7200_s24 }
 0x3d0   :  { %14 = sbr.rel (!%p12_p13) target bundleno = 3 (0x3), region = 88 }

</bundles_post_ra>
